<compile_context>
chip_gen: v7x
topology: tpu7x:2x2x1
jax: 0.10.0
libtpu: 0.0.40
codegen_flags: <defaults>
</compile_context>

<pallas_src>
import jax
import jax.numpy as jnp
from jax import lax
from jax.experimental import pallas as pl
from jax.experimental.pallas import tpu as pltpu


def self_attention_kernel(xq_ref, xkv_ref, wq_ref, wk_ref, wv_ref, wo_ref,
                          o_ref, q_sc, m_sc, l_sc, acc_sc):
    j = pl.program_id(1)                     # K/V tile index (reduction axis)
    mm_dtype = wq_ref.dtype                  # bf16 fast path or f32

    # --- per-query-tile init (runs once, at the first K/V step) -------------
    @pl.when(j == 0)
    def _():
        q = jnp.dot(xq_ref[...], wq_ref[...],
                    preferred_element_type=jnp.float32)
        q_sc[...] = q * 0.06
        m_sc[...] = jnp.full(m_sc.shape, -jnp.inf, dtype=m_sc.dtype)
        l_sc[...] = jnp.zeros(l_sc.shape, dtype=l_sc.dtype)
        acc_sc[...] = jnp.zeros(acc_sc.shape, dtype=acc_sc.dtype)

    # --- project this K/V tile (weights resident, f32 accumulation) ---------
    xkv = xkv_ref[...]
    k = jnp.dot(xkv, wk_ref[...], preferred_element_type=jnp.float32)
    v = jnp.dot(xkv, wv_ref[...], preferred_element_type=jnp.float32)

    # s = Q @ K^T without materializing a transpose: contract feature dims.
    s = lax.dot_general(
        q_sc[...].astype(mm_dtype), k.astype(mm_dtype),
        dimension_numbers=(((1,), (1,)), ((), ())),
        preferred_element_type=jnp.float32)

    # --- online softmax update (f32 elementwise math: v5e has no bf16 VPU) --
    m_prev = m_sc[...]
    m_new = jnp.maximum(m_prev, jnp.max(s, axis=-1, keepdims=True))
    alpha = jnp.exp(m_prev - m_new)
    p = jnp.exp(s - m_new)
    l_sc[...] = alpha * l_sc[...] + jnp.sum(p, axis=-1, keepdims=True)
    acc_sc[...] = alpha * acc_sc[...] + jnp.dot(
        p.astype(mm_dtype), v.astype(mm_dtype),
        preferred_element_type=jnp.float32)
    m_sc[...] = m_new

    # TODO(synk): Dropout(0.5) on the attention weights is stochastic in train
    # mode; implemented as identity (eval / inference semantics).

    # --- finalize on the last K/V step: normalize and apply output proj -----
    @pl.when(j == pl.num_programs(1) - 1)
    def _():
        y = acc_sc[...] * pl.reciprocal(l_sc[...], approx=True)
        out = jnp.dot(y.astype(mm_dtype), wo_ref[...],
                      preferred_element_type=jnp.float32)
        o_ref[...] = out.astype(o_ref.dtype)


def prepare_params(Wk, Wq, Wv, Wo, compute_dtype=jnp.float32):
    """One-time weight prep (outside the hot path): transpose PyTorch
    (out_features, in_features) layout to (in, out) and cast to the MXU input
    dtype (use jnp.bfloat16 on v6e/v7x for 2x MXU throughput; accumulation
    inside the kernel stays f32)."""
    return {
        "wq": Wq.T.astype(compute_dtype),
        "wk": Wk.T.astype(compute_dtype),
        "wv": Wv.T.astype(compute_dtype),
        "wo": Wo.T.astype(compute_dtype),
    }


def self_attention(x, params, *, tq=128, tkv=128):
    """x: (n, m). params: output of prepare_params. Returns (n, m) in x.dtype."""
    n, m = x.shape
    wq, wk, wv, wo = params["wq"], params["wk"], params["wv"], params["wo"]
    d = wq.shape[1]
    compute_dtype = wq.dtype
    out_dtype = x.dtype
    xc = x.astype(compute_dtype)

    # Keep tiles dividing n (fallback: whole sequence as one tile).
    if n % tq:
        tq = n
    if n % tkv:
        tkv = n
    grid = (n // tq, n // tkv)

    def resident(shape):
        # Weights: constant block index -> stay resident in VMEM, no re-DMA.
        return pl.BlockSpec(shape, lambda i, j: (0, 0))

    return pl.pallas_call(
        self_attention_kernel,
        out_shape=jax.ShapeDtypeStruct((n, m), out_dtype),
        grid_spec=pltpu.PrefetchScalarGridSpec(
            num_scalar_prefetch=0,
            grid=grid,
            in_specs=[
                pl.BlockSpec((tq, m), lambda i, j: (i, 0)),    # x rows -> Q
                pl.BlockSpec((tkv, m), lambda i, j: (j, 0)),   # x rows -> K/V
                resident((m, d)),                              # Wq^T
                resident((m, d)),                              # Wk^T
                resident((m, d)),                              # Wv^T
                resident((d, m)),                              # Wo^T
            ],
            out_specs=pl.BlockSpec((tq, m), lambda i, j: (i, 0)),
            scratch_shapes=[
                pltpu.VMEM((tq, d), jnp.float32),   # Q tile (computed at j==0)
                pltpu.VMEM((tq, 1), jnp.float32),   # running max
                pltpu.VMEM((tq, 1), jnp.float32),   # running sum
                pltpu.VMEM((tq, d), jnp.float32),   # output accumulator
            ],
        ),
        compiler_params=pltpu.CompilerParams(
            # Query tiles split across TensorCores (v7x megacore); the K/V
            # reduction axis is last and 'arbitrary'.
            dimension_semantics=("parallel", "arbitrary"),
            # Sized with headroom against v7x's 64 MiB physical VMEM per TC.
            vmem_limit_bytes=48 * 1024 * 1024,
        ),
    )(xc, xc, wq, wk, wv, wo)


def _linear_init(key, out_features, in_features):
    # Matches nn.Linear default: U(-1/sqrt(in), 1/sqrt(in))
    bound = 1.0 / (in_features ** 0.5)
    return jax.random.uniform(
        key, (out_features, in_features), jnp.float32, -bound, bound
    )


def _reference(x, Wk, Wq, Wv, Wo):
    K = x @ Wk.T
    Q = (x @ Wq.T) * 0.06
    V = x @ Wv.T
    logits = Q @ K.T
    att = jax.nn.softmax(logits, axis=-1)
    y = att @ V
    return y @ Wo.T


if __name__ == "__main__":
    # Small shapes consistent with the module (defaults are 1024/1024):
    # seq n=256, input_size m=128, output_size=128; 128x128 tiles -> grid (2,2).
    n, m, output_size = 256, 128, 128

    key = jax.random.PRNGKey(0)
    kx, kk, kq, kv, ko = jax.random.split(key, 5)

    x = jax.random.normal(kx, (n, m), jnp.float32)
    Wk = _linear_init(kk, output_size, m)
    Wq = _linear_init(kq, output_size, m)
    Wv = _linear_init(kv, output_size, m)
    Wo = _linear_init(ko, m, output_size)

    ref = _reference(x, Wk, Wq, Wv, Wo)

    # f32 MXU-input path (exact-ish; v5e-friendly).
    params_f32 = prepare_params(Wk, Wq, Wv, Wo, compute_dtype=jnp.float32)
    out_f32 = jax.block_until_ready(self_attention(x, params_f32, tq=128, tkv=128))
    assert out_f32.shape == (n, m)
    assert jnp.allclose(out_f32, ref, atol=1e-3, rtol=1e-3), "f32 kernel mismatch"

    # bf16 MXU-input fast path (v6e/v7x), f32 accumulation; looser tolerance.
    params_bf16 = prepare_params(Wk, Wq, Wv, Wo, compute_dtype=jnp.bfloat16)
    out_bf16 = jax.block_until_ready(self_attention(x, params_bf16, tq=128, tkv=128))
    assert out_bf16.dtype == x.dtype
    assert jnp.allclose(out_bf16, ref, atol=5e-3, rtol=5e-2), "bf16 kernel mismatch"

    print("KERNEL_OK")
</pallas_src>

<mosaic_0001>
module attributes {stable_mosaic.version = 11 : i64} {
  func.func @self_attention_kernel(%arg0: i32, %arg1: i32, %arg2: memref<128x128xf32, #tpu.memory_space<vmem>>, %arg3: memref<128x128xf32, #tpu.memory_space<vmem>>, %arg4: memref<128x128xf32, #tpu.memory_space<vmem>>, %arg5: memref<128x128xf32, #tpu.memory_space<vmem>>, %arg6: memref<128x128xf32, #tpu.memory_space<vmem>>, %arg7: memref<128x128xf32, #tpu.memory_space<vmem>>, %arg8: memref<128x128xf32, #tpu.memory_space<vmem>>, %arg9: memref<128x128xf32, #tpu.memory_space<vmem>>, %arg10: memref<128x1xf32, #tpu.memory_space<vmem>>, %arg11: memref<128x1xf32, #tpu.memory_space<vmem>>, %arg12: memref<128x128xf32, #tpu.memory_space<vmem>>) attributes {dimension_semantics = [#tpu.dimension_semantics<parallel>, #tpu.dimension_semantics<arbitrary>], iteration_bounds = array<i64: 2, 2>, scalar_prefetch = 0 : i64, scratch_operands = 4 : i64, tpu.core_type = #tpu.core_type<tc>, window_params = [{transform_indices = @transform_0, window_bounds = array<i64: 128, 128>}, {transform_indices = @transform_1, window_bounds = array<i64: 128, 128>}, {pipeline_mode = #tpu.pipeline_mode<synchronous>, transform_indices = @transform_2, window_bounds = array<i64: 128, 128>}, {pipeline_mode = #tpu.pipeline_mode<synchronous>, transform_indices = @transform_3, window_bounds = array<i64: 128, 128>}, {pipeline_mode = #tpu.pipeline_mode<synchronous>, transform_indices = @transform_4, window_bounds = array<i64: 128, 128>}, {pipeline_mode = #tpu.pipeline_mode<synchronous>, transform_indices = @transform_5, window_bounds = array<i64: 128, 128>}, {transform_indices = @transform_6, window_bounds = array<i64: 128, 128>}]} {
    %c0_i32 = arith.constant 0 : i32
    %0 = arith.cmpi eq, %arg1, %c0_i32 : i32
    %1 = arith.extui %0 : i1 to i32
    %c0_i32_0 = arith.constant 0 : i32
    %2 = arith.cmpi ne, %1, %c0_i32_0 : i32
    scf.if %2 {
      %c0_26 = arith.constant 0 : index
      %c0_27 = arith.constant 0 : index
      %35 = vector.load %arg2[%c0_26, %c0_27] : memref<128x128xf32, #tpu.memory_space<vmem>>, vector<128x128xf32>
      %c0_28 = arith.constant 0 : index
      %c0_29 = arith.constant 0 : index
      %36 = vector.load %arg4[%c0_28, %c0_29] : memref<128x128xf32, #tpu.memory_space<vmem>>, vector<128x128xf32>
      %cst_30 = arith.constant dense<0.000000e+00> : vector<128x128xf32>
      %37 = tpu.matmul %35, %36, %cst_30 {dimension_numbers = #tpu.dot_dimension_numbers<[1], [0], [0], [1], [0, 0, 1, 1], [], []>} : vector<128x128xf32>, vector<128x128xf32>, vector<128x128xf32> -> vector<128x128xf32>
      %cst_31 = arith.constant 6.000000e-02 : f32
      %38 = vector.broadcast %cst_31 : f32 to vector<128x128xf32>
      %39 = arith.mulf %37, %38 : vector<128x128xf32>
      %c0_32 = arith.constant 0 : index
      %c0_33 = arith.constant 0 : index
      %40 = vector.load %arg9[%c0_32, %c0_33] : memref<128x128xf32, #tpu.memory_space<vmem>>, vector<128x128xf32>
      tpu.vector_store %arg9[%c0_32, %c0_33], %39 {strides = array<i32>} : memref<128x128xf32, #tpu.memory_space<vmem>>, vector<128x128xf32>,
      %cst_34 = arith.constant 0xFF800000 : f32
      %41 = vector.broadcast %cst_34 : f32 to vector<128x1xf32>
      %c0_35 = arith.constant 0 : index
      %c0_36 = arith.constant 0 : index
      %42 = vector.load %arg10[%c0_35, %c0_36] : memref<128x1xf32, #tpu.memory_space<vmem>>, vector<128x1xf32>
      tpu.vector_store %arg10[%c0_35, %c0_36], %41 {strides = array<i32>} : memref<128x1xf32, #tpu.memory_space<vmem>>, vector<128x1xf32>,
      %cst_37 = arith.constant 0.000000e+00 : f32
      %43 = vector.broadcast %cst_37 : f32 to vector<128x1xf32>
      %c0_38 = arith.constant 0 : index
      %c0_39 = arith.constant 0 : index
      %44 = vector.load %arg11[%c0_38, %c0_39] : memref<128x1xf32, #tpu.memory_space<vmem>>, vector<128x1xf32>
      tpu.vector_store %arg11[%c0_38, %c0_39], %43 {strides = array<i32>} : memref<128x1xf32, #tpu.memory_space<vmem>>, vector<128x1xf32>,
      %cst_40 = arith.constant 0.000000e+00 : f32
      %45 = vector.broadcast %cst_40 : f32 to vector<128x128xf32>
      %c0_41 = arith.constant 0 : index
      %c0_42 = arith.constant 0 : index
      %46 = vector.load %arg12[%c0_41, %c0_42] : memref<128x128xf32, #tpu.memory_space<vmem>>, vector<128x128xf32>
      tpu.vector_store %arg12[%c0_41, %c0_42], %45 {strides = array<i32>} : memref<128x128xf32, #tpu.memory_space<vmem>>, vector<128x128xf32>,
    } else {
    }
    %c0 = arith.constant 0 : index
    %c0_1 = arith.constant 0 : index
    %3 = vector.load %arg3[%c0, %c0_1] : memref<128x128xf32, #tpu.memory_space<vmem>>, vector<128x128xf32>
    %c0_2 = arith.constant 0 : index
    %c0_3 = arith.constant 0 : index
    %4 = vector.load %arg5[%c0_2, %c0_3] : memref<128x128xf32, #tpu.memory_space<vmem>>, vector<128x128xf32>
    %cst = arith.constant dense<0.000000e+00> : vector<128x128xf32>
    %5 = tpu.matmul %3, %4, %cst {dimension_numbers = #tpu.dot_dimension_numbers<[1], [0], [0], [1], [0, 0, 1, 1], [], []>} : vector<128x128xf32>, vector<128x128xf32>, vector<128x128xf32> -> vector<128x128xf32>
    %c0_4 = arith.constant 0 : index
    %c0_5 = arith.constant 0 : index
    %6 = vector.load %arg6[%c0_4, %c0_5] : memref<128x128xf32, #tpu.memory_space<vmem>>, vector<128x128xf32>
    %cst_6 = arith.constant dense<0.000000e+00> : vector<128x128xf32>
    %7 = tpu.matmul %3, %6, %cst_6 {dimension_numbers = #tpu.dot_dimension_numbers<[1], [0], [0], [1], [0, 0, 1, 1], [], []>} : vector<128x128xf32>, vector<128x128xf32>, vector<128x128xf32> -> vector<128x128xf32>
    %c0_7 = arith.constant 0 : index
    %c0_8 = arith.constant 0 : index
    %8 = vector.load %arg9[%c0_7, %c0_8] : memref<128x128xf32, #tpu.memory_space<vmem>>, vector<128x128xf32>
    %cst_9 = arith.constant dense<0.000000e+00> : vector<128x128xf32>
    %9 = tpu.matmul %8, %5, %cst_9 {dimension_numbers = #tpu.dot_dimension_numbers<[1], [1], [0], [0], [0, 0, 1, 0], [], []>} : vector<128x128xf32>, vector<128x128xf32>, vector<128x128xf32> -> vector<128x128xf32>
    %c0_10 = arith.constant 0 : index
    %c0_11 = arith.constant 0 : index
    %10 = vector.load %arg10[%c0_10, %c0_11] : memref<128x1xf32, #tpu.memory_space<vmem>>, vector<128x1xf32>
    %cst_12 = arith.constant dense<0xFF800000> : vector<128xf32>
    %11 = vector.multi_reduction <maximumf>, %9, %cst_12 [1] : vector<128x128xf32> to vector<128xf32>
    %12 = vector.shape_cast %11 : vector<128xf32> to vector<128x1xf32>
    %13 = arith.maximumf %10, %12 : vector<128x1xf32>
    %14 = arith.subf %10, %13 : vector<128x1xf32>
    %15 = math.exp %14 : vector<128x1xf32>
    %16 = vector.broadcast %13 : vector<128x1xf32> to vector<128x128xf32>
    %17 = arith.subf %9, %16 : vector<128x128xf32>
    %18 = math.exp %17 : vector<128x128xf32>
    %c0_13 = arith.constant 0 : index
    %c0_14 = arith.constant 0 : index
    %19 = vector.load %arg11[%c0_13, %c0_14] : memref<128x1xf32, #tpu.memory_space<vmem>>, vector<128x1xf32>
    %20 = arith.mulf %15, %19 : vector<128x1xf32>
    %cst_15 = arith.constant dense<0.000000e+00> : vector<128xf32>
    %21 = vector.multi_reduction <add>, %18, %cst_15 [1] : vector<128x128xf32> to vector<128xf32>
    %22 = vector.shape_cast %21 : vector<128xf32> to vector<128x1xf32>
    %23 = arith.addf %20, %22 : vector<128x1xf32>
    %c0_16 = arith.constant 0 : index
    %c0_17 = arith.constant 0 : index
    %24 = vector.load %arg11[%c0_16, %c0_17] : memref<128x1xf32, #tpu.memory_space<vmem>>, vector<128x1xf32>
    tpu.vector_store %arg11[%c0_16, %c0_17], %23 {strides = array<i32>} : memref<128x1xf32, #tpu.memory_space<vmem>>, vector<128x1xf32>,
    %c0_18 = arith.constant 0 : index
    %c0_19 = arith.constant 0 : index
    %25 = vector.load %arg12[%c0_18, %c0_19] : memref<128x128xf32, #tpu.memory_space<vmem>>, vector<128x128xf32>
    %26 = vector.broadcast %15 : vector<128x1xf32> to vector<128x128xf32>
    %27 = arith.mulf %26, %25 : vector<128x128xf32>
    %cst_20 = arith.constant dense<0.000000e+00> : vector<128x128xf32>
    %28 = tpu.matmul %18, %7, %cst_20 {dimension_numbers = #tpu.dot_dimension_numbers<[1], [0], [0], [1], [0, 0, 1, 1], [], []>} : vector<128x128xf32>, vector<128x128xf32>, vector<128x128xf32> -> vector<128x128xf32>
    %29 = arith.addf %27, %28 : vector<128x128xf32>
    %c0_21 = arith.constant 0 : index
    %c0_22 = arith.constant 0 : index
    %30 = vector.load %arg12[%c0_21, %c0_22] : memref<128x128xf32, #tpu.memory_space<vmem>>, vector<128x128xf32>
    tpu.vector_store %arg12[%c0_21, %c0_22], %29 {strides = array<i32>} : memref<128x128xf32, #tpu.memory_space<vmem>>, vector<128x128xf32>,
    %c0_23 = arith.constant 0 : index
    %c0_24 = arith.constant 0 : index
    %31 = vector.load %arg10[%c0_23, %c0_24] : memref<128x1xf32, #tpu.memory_space<vmem>>, vector<128x1xf32>
    tpu.vector_store %arg10[%c0_23, %c0_24], %13 {strides = array<i32>} : memref<128x1xf32, #tpu.memory_space<vmem>>, vector<128x1xf32>,
    %c1_i32 = arith.constant 1 : i32
    %32 = arith.cmpi eq, %arg1, %c1_i32 : i32
    %33 = arith.extui %32 : i1 to i32
    %c0_i32_25 = arith.constant 0 : i32
    %34 = arith.cmpi ne, %33, %c0_i32_25 : i32
    scf.if %34 {
      %c0_26 = arith.constant 0 : index
      %c0_27 = arith.constant 0 : index
      %35 = vector.load %arg12[%c0_26, %c0_27] : memref<128x128xf32, #tpu.memory_space<vmem>>, vector<128x128xf32>
      %c0_28 = arith.constant 0 : index
      %c0_29 = arith.constant 0 : index
      %36 = vector.load %arg11[%c0_28, %c0_29] : memref<128x1xf32, #tpu.memory_space<vmem>>, vector<128x1xf32>
      %37 = tpu.reciprocal %36 {approx = true} : vector<128x1xf32> -> vector<128x1xf32>
      %38 = vector.broadcast %37 : vector<128x1xf32> to vector<128x128xf32>
      %39 = arith.mulf %35, %38 : vector<128x128xf32>
      %c0_30 = arith.constant 0 : index
      %c0_31 = arith.constant 0 : index
      %40 = vector.load %arg7[%c0_30, %c0_31] : memref<128x128xf32, #tpu.memory_space<vmem>>, vector<128x128xf32>
      %cst_32 = arith.constant dense<0.000000e+00> : vector<128x128xf32>
      %41 = tpu.matmul %39, %40, %cst_32 {dimension_numbers = #tpu.dot_dimension_numbers<[1], [0], [0], [1], [0, 0, 1, 1], [], []>} : vector<128x128xf32>, vector<128x128xf32>, vector<128x128xf32> -> vector<128x128xf32>
      %c0_33 = arith.constant 0 : index
      %c0_34 = arith.constant 0 : index
      %42 = vector.load %arg8[%c0_33, %c0_34] : memref<128x128xf32, #tpu.memory_space<vmem>>, vector<128x128xf32>
      tpu.vector_store %arg8[%c0_33, %c0_34], %41 {strides = array<i32>} : memref<128x128xf32, #tpu.memory_space<vmem>>, vector<128x128xf32>,
    } else {
    }
    return
  }
  func.func @transform_0(%arg0: i32, %arg1: i32) -> (i32, i32) {
    %c0_i32 = arith.constant 0 : i32
    %c0_i32_0 = arith.constant 0 : i32
    return %arg0, %c0_i32 : i32, i32
  }
  func.func @transform_1(%arg0: i32, %arg1: i32) -> (i32, i32) {
    %c0_i32 = arith.constant 0 : i32
    %c0_i32_0 = arith.constant 0 : i32
    return %arg1, %c0_i32 : i32, i32
  }
  func.func @transform_2(%arg0: i32, %arg1: i32) -> (i32, i32) {
    %c0_i32 = arith.constant 0 : i32
    %c0_i32_0 = arith.constant 0 : i32
    %c0_i32_1 = arith.constant 0 : i32
    return %c0_i32, %c0_i32_0 : i32, i32
  }
  func.func @transform_3(%arg0: i32, %arg1: i32) -> (i32, i32) {
    %c0_i32 = arith.constant 0 : i32
    %c0_i32_0 = arith.constant 0 : i32
    %c0_i32_1 = arith.constant 0 : i32
    return %c0_i32, %c0_i32_0 : i32, i32
  }
  func.func @transform_4(%arg0: i32, %arg1: i32) -> (i32, i32) {
    %c0_i32 = arith.constant 0 : i32
    %c0_i32_0 = arith.constant 0 : i32
    %c0_i32_1 = arith.constant 0 : i32
    return %c0_i32, %c0_i32_0 : i32, i32
  }
  func.func @transform_5(%arg0: i32, %arg1: i32) -> (i32, i32) {
    %c0_i32 = arith.constant 0 : i32
    %c0_i32_0 = arith.constant 0 : i32
    %c0_i32_1 = arith.constant 0 : i32
    return %c0_i32, %c0_i32_0 : i32, i32
  }
  func.func @transform_6(%arg0: i32, %arg1: i32) -> (i32, i32) {
    %c0_i32 = arith.constant 0 : i32
    %c0_i32_0 = arith.constant 0 : i32
    return %arg0, %c0_i32 : i32, i32
  }
}

</mosaic_0001>

<bundles_post_ra>
// kernel: tpu_custom_call.1
= control target key start
LH: loop header
LB: loop body
LE: loop exit
PB: predicated region body
PF: predicated region fallthrough
CT: control target
= control target key end

     0   :  { %s4559_s0 = inlined_call_operand.hbm [shape: f32[256,128], index: 0, kind: input, shape index: {}]   ;;  %s4560_s1 = inlined_call_operand.hbm [shape: f32[256,128], index: 1, kind: input, shape index: {}]   ;;  %s4561_s2 = inlined_call_operand.hbm [shape: f32[128,128], index: 2, kind: input, shape index: {}]   ;;  %s4562_s3 = inlined_call_operand.hbm [shape: f32[128,128], index: 3, kind: input, shape index: {}]   ;;  %s4563_s4 = inlined_call_operand.hbm [shape: f32[128,128], index: 4, kind: input, shape index: {}]   ;;  %s4564_s5 = inlined_call_operand.hbm [shape: f32[128,128], index: 5, kind: input, shape index: {}]   ;;  %s4565_s6 = inlined_call_operand.hbm [shape: f32[256,128], index: 6, kind: output, shape index: {}]  }
   0x1   :  { %4578 = sst [smem:[#allocation28_spill]] %s4559_s0 }
   0x2   :  { %4579 = sst [smem:[#allocation29_spill]] %s4561_s2 }
   0x3   :  { %4580 = sst [smem:[#allocation30_spill]] %s4562_s3 }
   0x4   :  { %4581 = sst [smem:[#allocation31_spill]] %s4563_s4 }
   0x5   :  { %4582 = sst [smem:[#allocation32_spill]] %s4565_s6 }
   0x6   :  { %11 = vsyncpa [#allocation7], 0 }
   0x7   :  { %13 = vsyncpa [#allocation7 + $0x1], 0 }
   0x8   :  { %14 = vsyncpa [#allocation10], 0 }
   0x9   :  { %16 = vsyncpa [#allocation10 + $0x1], 0 }
   0xa   :  { %17 = vsyncpa [#allocation13], 0 }
   0xb   :  { %18 = vsyncpa [#allocation16], 0 }
   0xc   :  { %19 = vsyncpa [#allocation8], 0 }
   0xd   :  { %21 = vsyncpa [#allocation8 + $0x1], 0  ;;  %s3672_s21 = smov 0   ;;  %s3674_s22 = smov 0  }
   0xe   :  { %s3676_s23 = smov 0   ;;  %s3678_s24 = smov 0  }
   0xf   :  { %s3680_s25 = smov 0   ;;  %s3682_s26 = smov 0  }
  0x10   :  { %s3684_s27 = smov 0   ;;  %s3686_s28 = smov 0  }
  0x11   :  { %s3688_s29 = smov 0   ;;  %s3690_s30 = smov 0  }
  0x12   :  { %s3692_s7 = smov 0  }
  0x13 LB: > { %4583 = sst [smem:[#allocation24_spill]] %s3604_s27  ;;  %s3726_s8 = sadd.s32 4294967295, %s3620_s7   ;;  %s3620_s7 = sphi %s3692_s7, %s27_s7   ;;  %s3616_s30 = sphi %s3690_s30, %s4633_s30   ;;  %s3612_s29 = sphi %s3688_s29, %s4632_s29   ;;  %s3608_s28 = sphi %s3686_s28, %s4631_s28   ;;  %s3604_s27 = sphi %s3684_s27, %s4630_s27   ;;  %s3600_s26 = sphi %s3682_s26, %s4629_s26   ;;  %s3596_s25 = sphi %s3680_s25, %s4628_s25   ;;  %s3592_s24 = sphi %s3678_s24, %s4627_s24   ;;  %s3588_s23 = sphi %s3676_s23, %s4626_s23   ;;  %s3584_s22 = sphi %s3674_s22, %s4625_s22   ;;  %s3580_s21 = sphi %s3672_s21, %s4624_s21  }
  0x14   : > { %4584 = sst [smem:[#allocation25_spill]] %s3608_s28  ;;  %p85_p0 = scmp.ne.s32.totalorder %s3584_s22, %s3580_s21 }
  0x15   : > { %p4566_p1 = scmp.eq.s32.totalorder %s3726_s8, 0  ;;  %p2272_p3 = scmp.ge.s32.totalorder %s3620_s7, 1 }
  0x16   : > { %p206_p4 = scmp.lt.s32.totalorder %s3620_s7, 5  ;;  %s3622_s11 = smov [#allocation11]  }
  0x17   : > { %p3735_p5 = por %p85_p0, %p4566_p1  ;;  %s218_s12 = sshll.u32 %s3622_s11, 4  ;;  %s219_s12 = int_to_ptr.vmem [resolvable:$true] %s218_s12 }
  0x18   : > { %p3739_p6 = pnand %p2272_p3, %p206_p4  ;;  %s3623_s14 = smov [#allocation12]  }
  0x19   : > { %s4585_s9 = scalar_select %p3735_p5, 1, 0 }
  0x1a   : > { %s4587_s10 = scalar_select %p3739_p6, 1, 0 }
  0x1b   : > { %4586 = sst [smem:[#allocation26_spill]] %s4585_s9  ;;  %p3076_p7 = pneg %p3739_p6 }
  0x1c   : > { %4588 = sst [smem:[#allocation27_spill]] %s4587_s10  ;;  %s231_s15 = sshll.u32 %s3623_s14, 4  ;;  %s3751_s15 = int_to_ptr.vmem [resolvable:$true] %s231_s15 }
  0x1d   : > { %p3747_p8 = pnand %p3076_p7, %p4566_p1  ;;  %s4590_s2 = sld [smem:[#allocation29_spill]] }
  0x1f   : > { %p3761_p10 = pneg %p3747_p8 }
  0x23   : > { %s3310_s18 = scalar_lea.hbm %s4590_s2, 2048 }
  0x24   : > { %p3311_p9 = scmp.ne.s32.totalorder %s4590_s2, %s3310_s18  ;;  %p3317_p13 = scmp.lt.u32.totalorder %s3310_s18, %s4590_s2 }
  0x26   : > { %p3313_p11 = pnand %p3761_p10, %p3311_p9 }
  0x28   : > { %p3314_p12 = pneg %p3313_p11 }
  0x2a   : > { %p3319_p0 = pnand %p3317_p13, %p3314_p12 }
  0x2c   : > { %3322 = shalt.err (!%p3319_p0)
}
  0x2d   : > { %s3323_s16 = scalar_lea.vmem %s219_s12, 2048  ;;  %p3331_p1 = scmp.lt.s32.totalorder %s219_s12, %s219_s12 }
  0x2e   : > { %p3324_p3 = scmp.ne.s32.totalorder %s219_s12, %s3323_s16  ;;  %p3332_p2 = scmp.lt.s32.totalorder %s3323_s16, %s3323_s16 }
  0x30   : > { %p3326_p4 = pnand %p3324_p3, %p3761_p10  ;;  %p3333_p5 = por %p3332_p2, %p3331_p1 }
  0x32   : > { %p3327_p7 = pneg %p3326_p4 }
  0x34   : > { %p3334_p6 = pnand %p3333_p5, %p3327_p7 }
  0x36   : > { %3337 = shalt.err (!%p3334_p6)
}
  0x37   : > { %s4576_s17 = smov 128   ;;  %s4577_s19 = smov 8  }
  0x38   : > { %3079 = dma.hbm_to_vmem [thread:$0]  (!%p3747_p8), %s4590_s2, 2048, %s219_s12, [#allocation10], %s4576_s17, %s4576_s17, %s4577_s19  }
  0x39   : > { %s4592_s3 = sld [smem:[#allocation30_spill]] }
  0x3f   : > { %s3338_s6 = scalar_lea.hbm %s4592_s3, 2048 }
  0x40   : > { %p3339_p1 = scmp.ne.s32.totalorder %s4592_s3, %s3338_s6  ;;  %p3345_p6 = scmp.lt.u32.totalorder %s3338_s6, %s4592_s3 }
  0x42   : > { %p3341_p2 = pnand %p3339_p1, %p3761_p10 }
  0x44   : > { %p3342_p5 = pneg %p3341_p2 }
  0x46   : > { %p3347_p9 = pnand %p3345_p6, %p3342_p5 }
  0x48   : > { %3350 = shalt.err (!%p3347_p9)
}
  0x49   : > { %s3351_s12 = scalar_lea.vmem %s3751_s15, 2048  ;;  %p3359_p0 = scmp.lt.s32.totalorder %s3751_s15, %s3751_s15 }
  0x4a   : > { %p3352_p11 = scmp.ne.s32.totalorder %s3751_s15, %s3351_s12  ;;  %p3360_p3 = scmp.lt.s32.totalorder %s3351_s12, %s3351_s12 }
  0x4c   : > { %p3354_p12 = pnand %p3352_p11, %p3761_p10  ;;  %p3361_p4 = por %p3360_p3, %p3359_p0 }
  0x4e   : > { %p3355_p13 = pneg %p3354_p12 }
  0x50   : > { %p3362_p7 = pnand %p3361_p4, %p3355_p13 }
  0x52   : > { %3365 = shalt.err (!%p3362_p7)
}
  0x53   : > { %3082 = dma.hbm_to_vmem [thread:$0]  (!%p3747_p8), %s4592_s3, 2048, %s3751_s15, [#allocation13], %s4576_s17, %s4576_s17, %s4577_s19  }
  0x54   : > { %s3626_s28 = smov [#allocation14]   ;;  %s3627_s18 = smov [#allocation15]  }
  0x55   : > { %s244_s9 = sshll.u32 %s3626_s28, 4  ;;  %s257_s20 = sshll.u32 %s3627_s18, 4  ;;  %s245_s9 = int_to_ptr.vmem [resolvable:$true] %s244_s9  ;;  %s258_s20 = int_to_ptr.vmem [resolvable:$true] %s257_s20 }
  0x56   : > { %s4593_s4 = sld [smem:[#allocation31_spill]] }
  0x5c   : > { %s3366_s16 = scalar_lea.hbm %s4593_s4, 2048 }
  0x5d   : > { %p3367_p1 = scmp.ne.s32.totalorder %s4593_s4, %s3366_s16  ;;  %p3373_p6 = scmp.lt.u32.totalorder %s3366_s16, %s4593_s4 }
  0x5f   : > { %p3369_p2 = pnand %p3367_p1, %p3761_p10 }
  0x61   : > { %p3370_p5 = pneg %p3369_p2 }
  0x63   : > { %p3375_p9 = pnand %p3373_p6, %p3370_p5 }
  0x65   : > { %3378 = shalt.err (!%p3375_p9)
}
  0x66   : > { %s3379_s15 = scalar_lea.vmem %s245_s9, 2048  ;;  %p3387_p0 = scmp.lt.s32.totalorder %s245_s9, %s245_s9 }
  0x67   : > { %p3380_p11 = scmp.ne.s32.totalorder %s245_s9, %s3379_s15  ;;  %p3388_p3 = scmp.lt.s32.totalorder %s3379_s15, %s3379_s15 }
  0x69   : > { %p3382_p12 = pnand %p3380_p11, %p3761_p10  ;;  %p3389_p4 = por %p3388_p3, %p3387_p0 }
  0x6b   : > { %p3383_p13 = pneg %p3382_p12 }
  0x6d   : > { %p3390_p7 = pnand %p3389_p4, %p3383_p13 }
  0x6f   : > { %3393 = shalt.err (!%p3390_p7)
}
  0x70   : > { %3085 = dma.hbm_to_vmem [thread:$0]  (!%p3747_p8), %s4593_s4, 2048, %s245_s9, [#allocation13], %s4576_s17, %s4576_s17, %s4577_s19  }
  0x71   : > { %s3394_s18 = scalar_lea.hbm %s4564_s5, 2048 }
  0x72   : > { %p3395_p1 = scmp.ne.s32.totalorder %s4564_s5, %s3394_s18  ;;  %p3401_p6 = scmp.lt.u32.totalorder %s3394_s18, %s4564_s5 }
  0x74   : > { %p3397_p2 = pnand %p3395_p1, %p3761_p10 }
  0x76   : > { %p3398_p5 = pneg %p3397_p2 }
  0x78   : > { %p3403_p9 = pnand %p3401_p6, %p3398_p5 }
  0x7a   : > { %3406 = shalt.err (!%p3403_p9)
}
  0x7b   : > { %s3407_s6 = scalar_lea.vmem %s258_s20, 2048  ;;  %p3415_p0 = scmp.lt.s32.totalorder %s258_s20, %s258_s20 }
  0x7c   : > { %p3408_p11 = scmp.ne.s32.totalorder %s258_s20, %s3407_s6  ;;  %p3416_p3 = scmp.lt.s32.totalorder %s3407_s6, %s3407_s6 }
  0x7e   : > { %p3410_p12 = pnand %p3408_p11, %p3761_p10  ;;  %p3417_p4 = por %p3416_p3, %p3415_p0 }
  0x80   : > { %p3411_p13 = pneg %p3410_p12 }
  0x82   : > { %p3418_p7 = pnand %p3417_p4, %p3411_p13 }
  0x84   : > { %3421 = shalt.err (!%p3418_p7)
}
  0x85   : > { %3088 = dma.hbm_to_vmem [thread:$0]  (!%p3747_p8), %s4564_s5, 2048, %s258_s20, [#allocation16], %s4576_s17, %s4576_s17, %s4577_s19  }
  0x86   : > { %s2271_s13 = sadd.s32 4294967294, %s3620_s7   ;;  %s39_s21 = sadd.s32 1, %s3616_s30 }
  0x87   : > { %p53_p10 = scmp.ne.s32.totalorder %s3600_s26, %s3596_s25  ;;  %p4574_p1 = scmp.eq.s32.totalorder %s3620_s7, 0 }
  0x88   : > { %p59_p2 = scmp.ne.s32.totalorder %s3596_s25, %s3592_s24  ;;  %p199_p5 = scmp.eq.s32.totalorder %s2271_s13, 3 }
  0x89   : > { %p55_p6 = por %p4574_p1, %p53_p10  ;;  %p4594_p9 = scmp.eq.s32.totalorder %s3726_s8, 3 }
  0x8a   : > { %p4596_p12 = scmp.eq.s32.totalorder %s3726_s8, 0  ;;  %p3869_p8 = por %p199_p5, %p59_p2 }
  0x8b   : > { %p3859_p11 = por %p4594_p9, %p53_p10  ;;  %p4573_p0 = scmp.lt.s32.totalorder %s3620_s7, 4 }
  0x8c   : > { %p3865_p13 = por %p4596_p12, %p59_p2  ;;  %s271_s27 = sand.u32 1, %s3600_s26  }
  0x8d   : > { %s4595_s2 = scalar_select %p3859_p11, 1, 0 }
  0x8e   : > { %s4598_s20 = scalar_select %p3869_p8, 1, 0 }
  0x8f   : > { %s2278_s28 = sshll.u32 %s271_s27, 7  ;;  %s2299_s18 = sshll.u32 %s3616_s30, 11 }
  0x90   : > { %s4599_s0 = sld [smem:[#allocation28_spill]]  ;;  %s275_s12 = scalar_lea.vmem [#allocation6], %s2278_s28 }
  0x91   : > { %s282_s6 = sshll.u32 %s275_s12, 4  ;;  %p3885_p3 = pnand %p4573_p0, %p55_p6  ;;  %s3881_s6 = int_to_ptr.vmem [resolvable:$true] %s282_s6 }
  0x92   : > { %s3889_s15 = scalar_lea.sflag [#allocation7], %s271_s27 }
  0x93   : > { %p3424_p7 = pneg %p3885_p3 }
  0x96   : > { %s3879_s16 = scalar_lea.hbm %s4599_s0, %s2299_s18  ;;  %s3427_s11 = scalar_lea.hbm %s4599_s0, 4096 }
  0x97   : > { %s3422_s13 = scalar_lea.hbm %s3879_s16, 2048  ;;  %p3428_p5 = scmp.lt.u32.totalorder %s3879_s16, %s4599_s0 }
  0x98   : > { %p3423_p4 = scmp.ne.s32.totalorder %s3879_s16, %s3422_s13  ;;  %p3429_p6 = scmp.lt.u32.totalorder %s3427_s11, %s3422_s13 }
  0x99   : > { %p3431_p12 = scmp.lt.u32.totalorder %s3422_s13, %s3879_s16 }
  0x9a   : > { %p3425_p10 = pnand %p3424_p7, %p3423_p4  ;;  %p3430_p9 = por %p3429_p6, %p3428_p5 }
  0x9c   : > { %p3426_p2 = pneg %p3425_p10  ;;  %p3432_p0 = por %p3431_p12, %p3430_p9 }
  0x9e   : > { %p3433_p1 = pnand %p3432_p0, %p3426_p2 }
  0xa0   : > { %3436 = shalt.err (!%p3433_p1)
}
  0xa1   : > { %s3437_s27 = scalar_lea.vmem %s3881_s6, 2048  ;;  %s3628_s28 = smov [#allocation6]  }
  0xa2   : > { %p3438_p4 = scmp.ne.s32.totalorder %s3881_s6, %s3437_s27  ;;  %s3442_s18 = sshll.u32 %s3628_s28, 4  ;;  %s3443_s18 = int_to_ptr.vmem [resolvable:$false] %s3442_s18 }
  0xa3   : > { %s3444_s14 = scalar_lea.vmem %s3443_s18, 4096  ;;  %p3445_p11 = scmp.lt.s32.totalorder %s3881_s6, %s3443_s18 }
  0xa4   : > { %p3440_p10 = pnand %p3438_p4, %p3424_p7  ;;  %p3446_p5 = scmp.lt.s32.totalorder %s3444_s14, %s3437_s27 }
  0xa6   : > { %p3441_p8 = pneg %p3440_p10  ;;  %p3447_p6 = por %p3446_p5, %p3445_p11 }
  0xa8   : > { %p3448_p9 = pnand %p3447_p6, %p3441_p8 }
  0xaa   : > { %3451 = shalt.err (!%p3448_p9)
}
  0xab   : > { %3092 = dma.hbm_to_vmem [thread:$0]  (!%p3885_p3), %s3879_s16, 2048, %s3881_s6, %s3889_s15, %s4576_s17, %s4576_s17, %s4577_s19  }
  0xac   : > { %s36_s9 = sadd.s32 1, %s3612_s29  ;;  %s46_s13 = sadd.s32 1, %s3600_s26 }
  0xad   : > { %p37_p1 = scmp.ge.s32.totalorder %s36_s9, 2  ;;  %s72_s11 = sadd.s32 1, %s3588_s23 }
  0xae   : > { %p79_p11 = scmp.ne.s32.totalorder %s3588_s23, %s3584_s22  ;;  %s292_s27 = sand.u32 1, %s3620_s7  }
  0xaf   : > { %s4635_s9 = smov (%p37_p1, %s36_s9), 0  ;;  %s4637_s21 = smov (!%p37_p1, %s39_s21), %s3616_s30 }
  0xb0   : > { %s69_s12 = ssub.s32 %s3612_s29, %s4635_s9  ;;  %p41_p8 = scmp.ge.s32.totalorder %s4637_s21, 2 }
  0xb1   : > { %p70_p0 = scmp.eq.s32.totalorder %s69_s12, 0  ;;  %p4601_p7 = scmp.eq.s32.totalorder %s3620_s7, 0 }
  0xb2   : > { %s294_s6 = sand.u32 1, %s3588_s23   ;;  %s4639_s21 = smov (%p41_p8, %s4637_s21), 0 }
  0xb3   : > { %p3935_p3 = por %p79_p11, %p4601_p7  ;;  %s43_s28 = ssub.s32 %s3616_s30, %s4639_s21 }
  0xb4   : > { %s3943_s15 = scalar_select %p70_p0, %s3588_s23, %s72_s11  }
  0xb5   : > { %s2281_s18 = sshll.u32 %s294_s6, 7  ;;  %p44_p2 = scmp.eq.s32.totalorder %s43_s28, 0 }
  0xb6   : > { %s2300_s14 = sshll.u32 %s3612_s29, 11  ;;  %s296_s17 = scalar_lea.vmem [#allocation9], %s2281_s18 }
  0xb7   : > { %s303_s19 = sshll.u32 %s296_s17, 4  ;;  %s3954_s4 = scalar_lea.hbm %s4560_s1, %s2300_s14  ;;  %s3956_s19 = int_to_ptr.vmem [resolvable:$true] %s303_s19 }
  0xb8   : > { %s3949_s0 = scalar_select %p44_p2, %s3600_s26, %s46_s13  }
  0xb9   : > { %p4603_p12 = scmp.lt.s32.totalorder %s3620_s7, 4  ;;  %s3966_s17 = scalar_lea.sflag [#allocation10], %s292_s27 }
  0xba   : > { %s3452_s13 = scalar_lea.hbm %s3954_s4, 2048  ;;  %s3457_s16 = scalar_lea.hbm %s4560_s1, 4096 }
  0xbb   : > { %p3962_p4 = pnand %p4603_p12, %p3935_p3  ;;  %p3453_p10 = scmp.ne.s32.totalorder %s3954_s4, %s3452_s13 }
  0xbc   : > { %p3458_p1 = scmp.lt.u32.totalorder %s3954_s4, %s4560_s1  ;;  %p3459_p11 = scmp.lt.u32.totalorder %s3457_s16, %s3452_s13 }
  0xbd   : > { %p3454_p5 = pneg %p3962_p4  ;;  %p3461_p0 = scmp.lt.u32.totalorder %s3452_s13, %s3954_s4 }
  0xbe   : > { %p3460_p8 = por %p3459_p11, %p3458_p1 }
  0xbf   : > { %p3455_p6 = pnand %p3454_p5, %p3453_p10 }
  0xc0   : > { %p3462_p7 = por %p3461_p0, %p3460_p8 }
  0xc1   : > { %p3456_p9 = pneg %p3455_p6 }
  0xc3   : > { %p3463_p3 = pnand %p3462_p7, %p3456_p9 }
  0xc5   : > { %3466 = shalt.err (!%p3463_p3)
}
  0xc6   : > { %s3467_s27 = scalar_lea.vmem %s3956_s19, 2048  ;;  %s3629_s14 = smov [#allocation9]  }
  0xc7   : > { %p3468_p2 = scmp.ne.s32.totalorder %s3956_s19, %s3467_s27  ;;  %s3472_s12 = sshll.u32 %s3629_s14, 4  ;;  %s3473_s12 = int_to_ptr.vmem [resolvable:$false] %s3472_s12 }
  0xc8   : > { %s3474_s3 = scalar_lea.vmem %s3473_s12, 4096  ;;  %p3475_p6 = scmp.lt.s32.totalorder %s3956_s19, %s3473_s12 }
  0xc9   : > { %p3470_p12 = pnand %p3468_p2, %p3454_p5  ;;  %p3476_p1 = scmp.lt.s32.totalorder %s3474_s3, %s3467_s27 }
  0xcb   : > { %p3471_p10 = pneg %p3470_p12  ;;  %p3477_p11 = por %p3476_p1, %p3475_p6 }
  0xcd   : > { %p3478_p8 = pnand %p3477_p11, %p3471_p10 }
  0xcf   : > { %3481 = shalt.err (!%p3478_p8)
}
  0xd0   : > { %s4605_s13 = smov 8   ;;  %s4606_s6 = smov 128  }
  0xd1   : > { %3095 = dma.hbm_to_vmem [thread:$0]  (!%p3962_p4), %s3954_s4, 2048, %s3956_s19, %s3966_s17, %s4606_s6, %s4606_s6, %s4605_s13  }
  0xd2   : > { %s4607_s16 = sld [smem:[#allocation27_spill]] }
  0xd8   : > { %p4608_p5 = scmp.ne.s32.totalorder %s4607_s16, 0 }
  0xd9   : > { %s4000_s28 = sand.u32 (!%p4608_p5), 1, %s3596_s25  }
  0xda   : > { %315 = sbr.rel (%p4608_p5) target bundleno = 1967 (0x7af), region = 44  ;;  %s2285_s18 = sshll.u32 (!%p4608_p5), %s4000_s28, 7 }
  0xdb   : > { %s318_s27 = scalar_lea.sflag (!%p4608_p5), [#allocation7], %s4000_s28  ;;  %s4004_s14 = scalar_lea.vmem (!%p4608_p5), [#allocation6], %s2285_s18 }
  0xe1   : > { %3555 = dma.done.wait (%p3865_p13), %s318_s27, 2048  }
  0xe2   : > { %3557 = vsyncadd (%p3865_p13), %s318_s27, 4294965248  ;;  %s4609_s4 = sld [smem:[#allocation26_spill]]  ;;  %s326_s19 = sand.u32 1, %s3726_s8  }
  0xe3   : > { %s328_s11 = sand.u32 1, %s3584_s22   ;;  %s327_s12 = scalar_lea.sflag [#allocation10], %s326_s19 }
  0xe4   : > { %s2286_s17 = sshll.u32 %s328_s11, 7 }
  0xe5   : > { %s4012_s3 = scalar_lea.vmem [#allocation9], %s2286_s17 }
  0xe8   : > { %p4610_p4 = scmp.ne.s32.totalorder %s4609_s4, 0 }
  0xea   : > { %3559 = dma.done.wait (%p4610_p4), %s327_s12, 2048  }
  0xeb   : > { %3561 = vsyncadd (%p4610_p4), %s327_s12, 4294965248  ;;  %p4611_p9 = scmp.eq.s32.totalorder %s3726_s8, 0 }
  0xed   : > { %3563 = dma.done.wait (%p4611_p9), [#allocation10], 2048   ;;  %p4612_p0 = pmov %p4611_p9 }
  0xef   : > { %3565 = vsyncadd (%p4612_p0), [#allocation10], 4294965248  ;;  %p4613_p13 = pmov %p4612_p0 }
  0xf0   : > { %p4614_p7 = pmov %p4612_p0 }
  0xf1   : > { %3567 = dma.done.wait (%p4613_p13), [#allocation13], 4096  }
  0xf2   : > { %3569 = vsyncadd (%p4614_p7), [#allocation13], 4294963200  ;;  %p4615_p3 = pmov %p4612_p0 }
  0xf3   : > { %p4616_p2 = pmov %p4612_p0 }
  0xf4   : > { %3571 = dma.done.wait (%p4615_p3), [#allocation16], 2048  }
  0xf5   : > { %3573 = vsyncadd (%p4616_p2), [#allocation16], 4294965248  ;;  %s4030_s10 = scalar_lea.vmem [#allocation17], %s2285_s18  ;;  %s4617_s13 = sld [smem:[#allocation24_spill]] }
  0xfb   : > { %p2292_p12 = scmp.ne.s32.totalorder %s4617_s13, 0 }
  0xfc   : > { %v403_v0 = vld [vmem:[#allocation11] sm:$0xff] (!%p2292_p12)  ;;  %v404_v1 = vld [vmem:[#allocation11 + $0x8] sm:$0xff] (!%p2292_p12)  ;;  %v405_v2 = vld [vmem:[#allocation11 + $0x10] sm:$0xff] (!%p2292_p12)  ;;  %vm596_vm0 = vcmask (!%p2292_p12), 7168   ;;  %v3630_v40 = vmov (!%p2292_p12), -inf   ;;  %v3631_v41 = vmov (!%p2292_p12), 0.0  }
  0xfd   : > { %386 = sbr.rel (%p2292_p12) target bundleno = 515 (0x203), region = 72  ;;  %v2830_v3 = vpack.c.bf16 (!%p2292_p12), %v404_v1, %v403_v0  ;;  %v406_v4 = vld [vmem:[#allocation11 + $0x18] sm:$0xff] (!%p2292_p12)  ;;  %v407_v6 = vld [vmem:[#allocation11 + $0x20] sm:$0xff] (!%p2292_p12)  ;;  %v408_v7 = vld [vmem:[#allocation11 + $0x28] sm:$0xff] (!%p2292_p12)  ;;  %597 = vst.msk [vmem:[#allocation3] sm:$0xff] (!%p2292_p12), %vm596_vm0, %v3630_v40 }
  0xfe   : > { %v2834_v5 = vpack.c.bf16 (!%p2292_p12), %v406_v4, %v405_v2  ;;  %v2838_v8 = vpack.c.bf16 (!%p2292_p12), %v408_v7, %v407_v6  ;;  %v387_v9 = vld [vmem:[%s4004_s14] sm:$0xff] (!%p2292_p12)  ;;  %v409_v11 = vld [vmem:[#allocation11 + $0x30] sm:$0xff] (!%p2292_p12)  ;;  %v410_v12 = vld [vmem:[#allocation11 + $0x38] sm:$0xff] (!%p2292_p12)  ;;  %598 = vst.msk [vmem:[#allocation3 + $0x8] sm:$0xff] (!%p2292_p12), %vm596_vm0, %v3630_v40 }
  0xff   : > { %2831 = vmatprep.subr.bf16.mxu0 (!%p2292_p12), %v2830_v3  ;;  %3022 = vmatprep.subr.bf16.mxu1 (!%p2292_p12), %v2830_v3  ;;  %v395_v10 = vld [vmem:[%s4004_s14 + $0x40] sm:$0xff] (!%p2292_p12)  ;;  %v2842_v13 = vpack.c.bf16 (!%p2292_p12), %v410_v12, %v409_v11  ;;  %v412_v15 = vld [vmem:[#allocation11 + $0x48] sm:$0xff] (!%p2292_p12)  ;;  %v413_v17 = vld [vmem:[#allocation11 + $0x50] sm:$0xff] (!%p2292_p12)  ;;  %599 = vst.msk [vmem:[#allocation3 + $0x10] sm:$0xff] (!%p2292_p12), %vm596_vm0, %v3630_v40 }
 0x100   : > { %2833 = vmatpush3.bf16.msra.mxu0 (!%p2292_p12), %v2830_v3  ;;  %3030 = vmatpush3.bf16.msra.mxu1 (!%p2292_p12), %v2830_v3  ;;  %v411_v14 = vld [vmem:[#allocation11 + $0x40] sm:$0xff] (!%p2292_p12)  ;;  %v414_v18 = vld [vmem:[#allocation11 + $0x58] sm:$0xff] (!%p2292_p12)  ;;  %v416_v21 = vld [vmem:[#allocation11 + $0x68] sm:$0xff] (!%p2292_p12)  ;;  %600 = vst.msk [vmem:[#allocation3 + $0x18] sm:$0xff] (!%p2292_p12), %vm596_vm0, %v3630_v40 }
 0x101   : > { %2835 = vmatprep.subr.bf16.mxu0 (!%p2292_p12), %v2834_v5  ;;  %3023 = vmatprep.subr.bf16.mxu1 (!%p2292_p12), %v2834_v5  ;;  %v2846_v16 = vpack.c.bf16 (!%p2292_p12), %v412_v15, %v411_v14  ;;  %v2850_v19 = vpack.c.bf16 (!%p2292_p12), %v414_v18, %v413_v17  ;;  %v415_v20 = vld [vmem:[#allocation11 + $0x60] sm:$0xff] (!%p2292_p12)  ;;  %v417_v23 = vld [vmem:[#allocation11 + $0x70] sm:$0xff] (!%p2292_p12)  ;;  %v418_v24 = vld [vmem:[#allocation11 + $0x78] sm:$0xff] (!%p2292_p12)  ;;  %601 = vst.msk [vmem:[#allocation3 + $0x20] sm:$0xff] (!%p2292_p12), %vm596_vm0, %v3630_v40 }
 0x102   : > { %2526 = vmatprep.mubr.f32.mxu0 (!%p2292_p12), %v387_v9  ;;  %2538 = vmatprep.mubr.f32.mxu1 (!%p2292_p12), %v395_v10  ;;  %v2854_v22 = vpack.c.bf16 (!%p2292_p12), %v416_v21, %v415_v20  ;;  %v2858_v25 = vpack.c.bf16 (!%p2292_p12), %v418_v24, %v417_v23  ;;  %v388_v26 = vld [vmem:[%s4004_s14 + $0x8] sm:$0xff] (!%p2292_p12)  ;;  %v389_v28 = vld [vmem:[%s4004_s14 + $0x10] sm:$0xff] (!%p2292_p12)  ;;  %v390_v30 = vld [vmem:[%s4004_s14 + $0x18] sm:$0xff] (!%p2292_p12)  ;;  %602 = vst.msk [vmem:[#allocation3 + $0x28] sm:$0xff] (!%p2292_p12), %vm596_vm0, %v3630_v40 }
 0x103   : > { %v396_v27 = vld [vmem:[%s4004_s14 + $0x48] sm:$0xff] (!%p2292_p12)  ;;  %v397_v29 = vld [vmem:[%s4004_s14 + $0x50] sm:$0xff] (!%p2292_p12)  ;;  %v398_v31 = vld [vmem:[%s4004_s14 + $0x58] sm:$0xff] (!%p2292_p12)  ;;  %603 = vst.msk [vmem:[#allocation3 + $0x30] sm:$0xff] (!%p2292_p12), %vm596_vm0, %v3630_v40 }
 0x104   : > { %2837 = vmatpush3.bf16.msra.mxu0 %v2834_v5  ;;  %3031 = vmatpush3.bf16.msra.mxu1 %v2834_v5  ;;  %v391_v32 = vld [vmem:[%s4004_s14 + $0x20] sm:$0xff]  ;;  %v392_v34 = vld [vmem:[%s4004_s14 + $0x28] sm:$0xff]  ;;  %v393_v36 = vld [vmem:[%s4004_s14 + $0x30] sm:$0xff]  ;;  %604 = vst.msk [vmem:[#allocation3 + $0x38] sm:$0xff] %vm596_vm0, %v3630_v40 }
 0x105   : > { %2839 = vmatprep.subr.bf16.mxu0 %v2838_v8  ;;  %3024 = vmatprep.subr.bf16.mxu1 %v2838_v8  ;;  %v399_v33 = vld [vmem:[%s4004_s14 + $0x60] sm:$0xff]  ;;  %v400_v35 = vld [vmem:[%s4004_s14 + $0x68] sm:$0xff]  ;;  %v401_v37 = vld [vmem:[%s4004_s14 + $0x70] sm:$0xff]  ;;  %605 = vst.msk [vmem:[#allocation3 + $0x40] sm:$0xff] %vm596_vm0, %v3630_v40 }
 0x106   : > { %v394_v38 = vld [vmem:[%s4004_s14 + $0x38] sm:$0xff]  ;;  %606 = vst.msk [vmem:[#allocation3 + $0x48] sm:$0xff] %vm596_vm0, %v3630_v40  ;;  %607 = vst.msk [vmem:[#allocation3 + $0x50] sm:$0xff] %vm596_vm0, %v3630_v40 }
 0x107   : > { %v402_v39 = vld [vmem:[%s4004_s14 + $0x78] sm:$0xff]  ;;  %608 = vst.msk [vmem:[#allocation3 + $0x58] sm:$0xff] %vm596_vm0, %v3630_v40  ;;  %609 = vst.msk [vmem:[#allocation3 + $0x60] sm:$0xff] %vm596_vm0, %v3630_v40 }
 0x108   : > { %2841 = vmatpush3.bf16.msra.mxu0 %v2838_v8  ;;  %3032 = vmatpush3.bf16.msra.mxu1 %v2838_v8  ;;  %610 = vst.msk [vmem:[#allocation3 + $0x68] sm:$0xff] %vm596_vm0, %v3630_v40  ;;  %611 = vst.msk [vmem:[#allocation3 + $0x70] sm:$0xff] %vm596_vm0, %v3630_v40 }
 0x109   : > { %2843 = vmatprep.subr.bf16.mxu0 %v2842_v13  ;;  %3025 = vmatprep.subr.bf16.mxu1 %v2842_v13  ;;  %612 = vst.msk [vmem:[#allocation3 + $0x78] sm:$0xff] %vm596_vm0, %v3630_v40  ;;  %613 = vst.msk [vmem:[#allocation4] sm:$0xff] %vm596_vm0, %v3631_v41 }
 0x10a   : > { %614 = vst.msk [vmem:[#allocation4 + $0x8] sm:$0xff] %vm596_vm0, %v3631_v41  ;;  %615 = vst.msk [vmem:[#allocation4 + $0x10] sm:$0xff] %vm596_vm0, %v3631_v41 }
 0x10b   : > { %616 = vst.msk [vmem:[#allocation4 + $0x18] sm:$0xff] %vm596_vm0, %v3631_v41  ;;  %617 = vst.msk [vmem:[#allocation4 + $0x20] sm:$0xff] %vm596_vm0, %v3631_v41 }
 0x10c   : > { %2845 = vmatpush3.bf16.msra.mxu0 %v2842_v13  ;;  %3033 = vmatpush3.bf16.msra.mxu1 %v2842_v13  ;;  %618 = vst.msk [vmem:[#allocation4 + $0x28] sm:$0xff] %vm596_vm0, %v3631_v41  ;;  %619 = vst.msk [vmem:[#allocation4 + $0x30] sm:$0xff] %vm596_vm0, %v3631_v41 }
 0x10d   : > { %2847 = vmatprep.subr.bf16.mxu0 %v2846_v16  ;;  %3026 = vmatprep.subr.bf16.mxu1 %v2846_v16  ;;  %620 = vst.msk [vmem:[#allocation4 + $0x38] sm:$0xff] %vm596_vm0, %v3631_v41  ;;  %621 = vst.msk [vmem:[#allocation4 + $0x40] sm:$0xff] %vm596_vm0, %v3631_v41 }
 0x10e   : > { %622 = vst.msk [vmem:[#allocation4 + $0x48] sm:$0xff] %vm596_vm0, %v3631_v41  ;;  %623 = vst.msk [vmem:[#allocation4 + $0x50] sm:$0xff] %vm596_vm0, %v3631_v41 }
 0x10f   : > { %624 = vst.msk [vmem:[#allocation4 + $0x58] sm:$0xff] %vm596_vm0, %v3631_v41  ;;  %625 = vst.msk [vmem:[#allocation4 + $0x60] sm:$0xff] %vm596_vm0, %v3631_v41 }
 0x110   : > { %2849 = vmatpush3.bf16.msra.mxu0 %v2846_v16  ;;  %3034 = vmatpush3.bf16.msra.mxu1 %v2846_v16  ;;  %626 = vst.msk [vmem:[#allocation4 + $0x68] sm:$0xff] %vm596_vm0, %v3631_v41  ;;  %627 = vst.msk [vmem:[#allocation4 + $0x70] sm:$0xff] %vm596_vm0, %v3631_v41 }
 0x111   : > { %2851 = vmatprep.subr.bf16.mxu0 %v2850_v19  ;;  %3027 = vmatprep.subr.bf16.mxu1 %v2850_v19  ;;  %628 = vst.msk [vmem:[#allocation4 + $0x78] sm:$0xff] %vm596_vm0, %v3631_v41  ;;  %629 = vst [vmem:[#allocation5] sm:$0xff] %v3631_v41 }
 0x112   : > { %630 = vst [vmem:[#allocation5 + $0x8] sm:$0xff] %v3631_v41  ;;  %631 = vst [vmem:[#allocation5 + $0x10] sm:$0xff] %v3631_v41 }
 0x113   : > { %632 = vst [vmem:[#allocation5 + $0x18] sm:$0xff] %v3631_v41  ;;  %633 = vst [vmem:[#allocation5 + $0x20] sm:$0xff] %v3631_v41 }
 0x114   : > { %2853 = vmatpush3.bf16.msra.mxu0 %v2850_v19  ;;  %3035 = vmatpush3.bf16.msra.mxu1 %v2850_v19  ;;  %634 = vst [vmem:[#allocation5 + $0x28] sm:$0xff] %v3631_v41  ;;  %635 = vst [vmem:[#allocation5 + $0x30] sm:$0xff] %v3631_v41 }
 0x115   : > { %2855 = vmatprep.subr.bf16.mxu0 %v2854_v22  ;;  %3028 = vmatprep.subr.bf16.mxu1 %v2854_v22  ;;  %636 = vst [vmem:[#allocation5 + $0x38] sm:$0xff] %v3631_v41  ;;  %637 = vst [vmem:[#allocation5 + $0x40] sm:$0xff] %v3631_v41 }
 0x116   : > { %638 = vst [vmem:[#allocation5 + $0x48] sm:$0xff] %v3631_v41  ;;  %639 = vst [vmem:[#allocation5 + $0x50] sm:$0xff] %v3631_v41 }
 0x117   : > { %640 = vst [vmem:[#allocation5 + $0x58] sm:$0xff] %v3631_v41  ;;  %641 = vst [vmem:[#allocation5 + $0x60] sm:$0xff] %v3631_v41 }
 0x118   : > { %2857 = vmatpush3.bf16.msra.mxu0 %v2854_v22  ;;  %3036 = vmatpush3.bf16.msra.mxu1 %v2854_v22  ;;  %642 = vst [vmem:[#allocation5 + $0x68] sm:$0xff] %v3631_v41  ;;  %643 = vst [vmem:[#allocation5 + $0x70] sm:$0xff] %v3631_v41 }
 0x119   : > { %2859 = vmatprep.subr.bf16.mxu0 %v2858_v25  ;;  %3029 = vmatprep.subr.bf16.mxu1 %v2858_v25  ;;  %644 = vst [vmem:[#allocation5 + $0x78] sm:$0xff] %v3631_v41 }
 0x11c   : > { %2861 = vmatpush3.bf16.msra.mxu0 %v2858_v25  ;;  %3037 = vmatpush3.bf16.msra.mxu1 %v2858_v25 }
 0x11f   : > { %2527 = vmatmul.mubr.f32.vlgmr.msra.gmra.mrb[0].mxu0 %v388_v26  ;;  %2539 = vmatmul.mubr.f32.vlgmr.msra.gmra.mrb[0].mxu1 %v396_v27 }
 0x120   : > { %2529 = vmatprep.mubr.f32.mxu0 %v389_v28  ;;  %2541 = vmatprep.mubr.f32.mxu1 %v397_v29 }
 0x123   : > { %2530 = vmatmul.mubr.f32.gmra.mrb[2].mxu0 %v390_v30  ;;  %2542 = vmatmul.mubr.f32.gmra.mrb[2].mxu1 %v398_v31 }
 0x124   : > { %2532 = vmatprep.mubr.f32.mxu0 %v391_v32  ;;  %2544 = vmatprep.mubr.f32.mxu1 %v399_v33 }
 0x127   : > { %2533 = vmatmul.mubr.f32.gmra.mrb[4].mxu0 %v392_v34  ;;  %2545 = vmatmul.mubr.f32.gmra.mrb[4].mxu1 %v400_v35 }
 0x128   : > { %2535 = vmatprep.mubr.f32.mxu0 %v393_v36  ;;  %2547 = vmatprep.mubr.f32.mxu1 %v401_v37 }
 0x12b   : > { %2536 = vmatmul.mubr.f32.gmra.mrb[6].mxu0 %v394_v38  ;;  %2548 = vmatmul.mubr.f32.gmra.mrb[6].mxu1 %v402_v39 }
 0x1f2   : > { %v2528_v42 = vpop.f32.mrb[0].mxu0  ;;  %v2540_v43 = vpop.f32.mrb[0].mxu1 }
 0x1f3   : > { %v565_v44 = vmul.f32 0.06, %v2528_v42  ;;  %v573_v45 = vmul.f32 0.06, %v2540_v43  ;;  %v485_v46 = vpop.f32.mrb[1].mxu0  ;;  %v525_v47 = vpop.f32.mrb[1].mxu1 }
 0x1f4   : > { %v564_v48 = vmul.f32 0.06, %v485_v46  ;;  %v572_v49 = vmul.f32 0.06, %v525_v47 }
 0x1f5   : > { %581 = vst [vmem:[#allocation2 + $0x8] sm:$0xff] %v565_v44  ;;  %589 = vst [vmem:[#allocation2 + $0x48] sm:$0xff] %v573_v45 }
 0x1f6   : > { %580 = vst [vmem:[#allocation2] sm:$0xff] %v564_v48  ;;  %588 = vst [vmem:[#allocation2 + $0x40] sm:$0xff] %v572_v49  ;;  %v2531_v50 = vpop.f32.mrb[2].mxu0  ;;  %v2543_v51 = vpop.f32.mrb[2].mxu1 }
 0x1f7   : > { %v567_v52 = vmul.f32 0.06, %v2531_v50  ;;  %v575_v53 = vmul.f32 0.06, %v2543_v51  ;;  %v495_v54 = vpop.f32.mrb[3].mxu0  ;;  %v535_v55 = vpop.f32.mrb[3].mxu1 }
 0x1f8   : > { %v566_v56 = vmul.f32 0.06, %v495_v54  ;;  %v574_v57 = vmul.f32 0.06, %v535_v55 }
 0x1f9   : > { %583 = vst [vmem:[#allocation2 + $0x18] sm:$0xff] %v567_v52  ;;  %591 = vst [vmem:[#allocation2 + $0x58] sm:$0xff] %v575_v53 }
 0x1fa   : > { %582 = vst [vmem:[#allocation2 + $0x10] sm:$0xff] %v566_v56  ;;  %590 = vst [vmem:[#allocation2 + $0x50] sm:$0xff] %v574_v57  ;;  %v2534_v58 = vpop.f32.mrb[4].mxu0  ;;  %v2546_v59 = vpop.f32.mrb[4].mxu1 }
 0x1fb   : > { %v569_v60 = vmul.f32 0.06, %v2534_v58  ;;  %v577_v61 = vmul.f32 0.06, %v2546_v59  ;;  %v505_v62 = vpop.f32.mrb[5].mxu0  ;;  %v545_v63 = vpop.f32.mrb[5].mxu1 }
 0x1fc   : > { %v568_v0 = vmul.f32 0.06, %v505_v62  ;;  %v576_v1 = vmul.f32 0.06, %v545_v63 }
 0x1fd   : > { %585 = vst [vmem:[#allocation2 + $0x28] sm:$0xff] %v569_v60  ;;  %593 = vst [vmem:[#allocation2 + $0x68] sm:$0xff] %v577_v61 }
 0x1fe   : > { %584 = vst [vmem:[#allocation2 + $0x20] sm:$0xff] %v568_v0  ;;  %592 = vst [vmem:[#allocation2 + $0x60] sm:$0xff] %v576_v1  ;;  %v2537_v2 = vpop.f32.mrb[6].mxu0  ;;  %v2549_v3 = vpop.f32.mrb[6].mxu1 }
 0x1ff   : > { %v571_v4 = vmul.f32 0.06, %v2537_v2  ;;  %v579_v5 = vmul.f32 0.06, %v2549_v3  ;;  %v515_v6 = vpop.f32.mrb[7].mxu0  ;;  %v555_v7 = vpop.f32.mrb[7].mxu1 }
 0x200   : > { %v570_v8 = vmul.f32 0.06, %v515_v6  ;;  %v578_v9 = vmul.f32 0.06, %v555_v7 }
 0x201   : > { %587 = vst [vmem:[#allocation2 + $0x38] sm:$0xff] %v571_v4  ;;  %595 = vst [vmem:[#allocation2 + $0x78] sm:$0xff] %v579_v5 }
 0x202   : > { %586 = vst [vmem:[#allocation2 + $0x30] sm:$0xff] %v570_v8  ;;  %594 = vst [vmem:[#allocation2 + $0x70] sm:$0xff] %v578_v9 }
 0x203 PF: > { %v661_v10 = vld [vmem:[#allocation12] sm:$0xff]  ;;  %v662_v11 = vld [vmem:[#allocation12 + $0x8] sm:$0xff]  ;;  %v663_v12 = vld [vmem:[#allocation12 + $0x10] sm:$0xff]  ;;  %vm1464_vm1 = vcmask 7168   ;;  %s4618_s8 = sld [smem:[#allocation24_spill]] }
 0x204   : > { %v2862_v13 = vpack.c.bf16 %v662_v11, %v661_v10  ;;  %v664_v14 = vld [vmem:[#allocation12 + $0x18] sm:$0xff]  ;;  %v665_v16 = vld [vmem:[#allocation12 + $0x20] sm:$0xff]  ;;  %v666_v17 = vld [vmem:[#allocation12 + $0x28] sm:$0xff] }
 0x205   : > { %v2866_v15 = vpack.c.bf16 %v664_v14, %v663_v12  ;;  %v2870_v18 = vpack.c.bf16 %v666_v17, %v665_v16  ;;  %v645_v19 = vld [vmem:[%s4012_s3] sm:$0xff]  ;;  %v667_v20 = vld [vmem:[#allocation12 + $0x30] sm:$0xff]  ;;  %v668_v21 = vld [vmem:[#allocation12 + $0x38] sm:$0xff] }
 0x206   : > { %2863 = vmatprep.subr.bf16.mxu0 %v2862_v13  ;;  %2582 = vmatprep.mubr.f32.mxu0 %v645_v19  ;;  %v2874_v22 = vpack.c.bf16 %v668_v21, %v667_v20  ;;  %v669_v23 = vld [vmem:[#allocation12 + $0x40] sm:$0xff]  ;;  %v670_v24 = vld [vmem:[#allocation12 + $0x48] sm:$0xff]  ;;  %v671_v26 = vld [vmem:[#allocation12 + $0x50] sm:$0xff] }
 0x207   : > { %2865 = vmatpush3.bf16.msra.mxu0 %v2862_v13  ;;  %2638 = vmatprep.mubr.f32.mxu1 %v645_v19  ;;  %v2878_v25 = vpack.c.bf16 %v670_v24, %v669_v23  ;;  %v672_v27 = vld [vmem:[#allocation12 + $0x58] sm:$0xff]  ;;  %v673_v29 = vld [vmem:[#allocation12 + $0x60] sm:$0xff]  ;;  %v674_v30 = vld [vmem:[#allocation12 + $0x68] sm:$0xff] }
 0x208   : > { %2867 = vmatprep.subr.bf16.mxu0 %v2866_v15  ;;  %v2882_v28 = vpack.c.bf16 %v672_v27, %v671_v26  ;;  %v2886_v31 = vpack.c.bf16 %v674_v30, %v673_v29  ;;  %v675_v32 = vld [vmem:[#allocation12 + $0x70] sm:$0xff]  ;;  %v676_v33 = vld [vmem:[#allocation12 + $0x78] sm:$0xff]  ;;  %v4083_v35 = vld [vmem:[%s4012_s3 + $0x8] sm:$0xff] }
 0x209   : > { %v2890_v34 = vpack.c.bf16 %v676_v33, %v675_v32  ;;  %v4086_v36 = vld [vmem:[%s4012_s3 + $0x10] sm:$0xff]  ;;  %v4091_v37 = vld [vmem:[%s4012_s3 + $0x18] sm:$0xff]  ;;  %v4094_v38 = vld [vmem:[%s4012_s3 + $0x20] sm:$0xff]  ;;  %p2293_p10 = scmp.ne.s32.totalorder %s4618_s8, 1 }
 0x20a   : > { %v4099_v39 = vld [vmem:[%s4012_s3 + $0x28] sm:$0xff]  ;;  %v4102_v40 = vld [vmem:[%s4012_s3 + $0x30] sm:$0xff]  ;;  %v4107_v41 = vld [vmem:[%s4012_s3 + $0x38] sm:$0xff] }
 0x20b   : > { %2869 = vmatpush3.bf16.msra.mxu0 %v2866_v15  ;;  %v4110_v42 = vld [vmem:[%s4012_s3 + $0x40] sm:$0xff]  ;;  %v4115_v43 = vld [vmem:[%s4012_s3 + $0x48] sm:$0xff]  ;;  %v4118_v44 = vld [vmem:[%s4012_s3 + $0x50] sm:$0xff] }
 0x20c   : > { %2871 = vmatprep.subr.bf16.mxu0 %v2870_v18  ;;  %v4123_v45 = vld [vmem:[%s4012_s3 + $0x58] sm:$0xff]  ;;  %v4126_v46 = vld [vmem:[%s4012_s3 + $0x60] sm:$0xff]  ;;  %v4131_v47 = vld [vmem:[%s4012_s3 + $0x68] sm:$0xff] }
 0x20d   : > { %v4134_v48 = vld [vmem:[%s4012_s3 + $0x70] sm:$0xff]  ;;  %v4139_v49 = vld [vmem:[%s4012_s3 + $0x78] sm:$0xff]  ;;  %v983_v50 = vld [vmem:[#allocation2] sm:$0xff] }
 0x20e   : > { %v984_v11 = vld [vmem:[#allocation2 + $0x8] sm:$0xff]  ;;  %v985_v12 = vld [vmem:[#allocation2 + $0x10] sm:$0xff]  ;;  %v986_v13 = vld [vmem:[#allocation2 + $0x18] sm:$0xff] }
 0x20f   : > { %2873 = vmatpush3.bf16.msra.mxu0 %v2870_v18  ;;  %v987_v14 = vld [vmem:[#allocation2 + $0x20] sm:$0xff]  ;;  %v988_v15 = vld [vmem:[#allocation2 + $0x28] sm:$0xff]  ;;  %v989_v16 = vld [vmem:[#allocation2 + $0x30] sm:$0xff] }
 0x210   : > { %2875 = vmatprep.subr.bf16.mxu0 %v2874_v22  ;;  %v990_v17 = vld [vmem:[#allocation2 + $0x38] sm:$0xff]  ;;  %v991_v18 = vld [vmem:[#allocation2 + $0x40] sm:$0xff]  ;;  %v992_v19 = vld [vmem:[#allocation2 + $0x48] sm:$0xff] }
 0x211   : > { %v993_v20 = vld [vmem:[#allocation2 + $0x50] sm:$0xff]  ;;  %v994_v21 = vld [vmem:[#allocation2 + $0x58] sm:$0xff]  ;;  %v996_v23 = vld [vmem:[#allocation2 + $0x68] sm:$0xff] }
 0x212   : > { %v997_v24 = vld [vmem:[#allocation2 + $0x70] sm:$0xff]  ;;  %v822_v26 = vld [vmem:[#allocation14] sm:$0xff]  ;;  %v823_v27 = vld [vmem:[#allocation14 + $0x8] sm:$0xff] }
 0x213   : > { %2877 = vmatpush3.bf16.msra.mxu0 %v2874_v22  ;;  %v995_v22 = vld [vmem:[#allocation2 + $0x60] sm:$0xff]  ;;  %v824_v29 = vld [vmem:[#allocation14 + $0x10] sm:$0xff]  ;;  %v825_v30 = vld [vmem:[#allocation14 + $0x18] sm:$0xff] }
 0x214   : > { %2879 = vmatprep.subr.bf16.mxu0 %v2878_v25  ;;  %v826_v32 = vld [vmem:[#allocation14 + $0x20] sm:$0xff]  ;;  %v827_v33 = vld [vmem:[#allocation14 + $0x28] sm:$0xff] }
 0x217   : > { %2881 = vmatpush3.bf16.msra.mxu0 %v2878_v25  ;;  %v998_v25 = vld [vmem:[#allocation2 + $0x78] sm:$0xff] }
 0x218   : > { %2883 = vmatprep.subr.bf16.mxu0 %v2882_v28 }
 0x21b   : > { %2885 = vmatpush3.bf16.msra.mxu0 %v2882_v28  ;;  %v2894_v28 = vpack.c.bf16 %v823_v27, %v822_v26  ;;  %v4223_v27 = vld [vmem:[#allocation3 + $0x10] sm:$0xff] }
 0x21c   : > { %2887 = vmatprep.subr.bf16.mxu0 %v2886_v31 }
 0x21d   : > { %2895 = vmatprep.subr.bf16.mxu1 %v2894_v28 }
 0x21e   : > { %2897 = vmatpush3.bf16.msra.mxu1 %v2894_v28  ;;  %v4227_v28 = vld [vmem:[#allocation3 + $0x20] sm:$0xff] }
 0x21f   : > { %2889 = vmatpush3.bf16.msra.mxu0 %v2886_v31  ;;  %v2898_v31 = vpack.c.bf16 %v825_v30, %v824_v29 }
 0x220   : > { %2891 = vmatprep.subr.bf16.mxu0 %v2890_v34 }
 0x221   : > { %2899 = vmatprep.subr.bf16.mxu1 %v2898_v31 }
 0x222   : > { %2901 = vmatpush3.bf16.msra.mxu1 %v2898_v31 }
 0x223   : > { %2893 = vmatpush3.bf16.msra.mxu0 %v2890_v34  ;;  %v2902_v34 = vpack.c.bf16 %v827_v33, %v826_v32 }
 0x225   : > { %2903 = vmatprep.subr.bf16.mxu1 %v2902_v34 }
 0x226   : > { %2583 = vmatmul.mubr.f32.vlgmr.msra.gmra.mrb[0].mxu0 %v4083_v35  ;;  %2905 = vmatpush3.bf16.msra.mxu1 %v2902_v34 }
 0x227   : > { %2585 = vmatprep.mubr.f32.mxu0 %v4086_v36 }
 0x22a   : > { %2586 = vmatmul.mubr.f32.gmra.mrb[2].mxu0 %v4091_v37 }
 0x22b   : > { %2588 = vmatprep.mubr.f32.mxu0 %v4094_v38 }
 0x22e   : > { %2589 = vmatmul.mubr.f32.gmra.mrb[4].mxu0 %v4099_v39 }
 0x22f   : > { %2591 = vmatprep.mubr.f32.mxu0 %v4102_v40 }
 0x232   : > { %2592 = vmatmul.mubr.f32.gmra.mrb[6].mxu0 %v4107_v41 }
 0x233   : > { %2594 = vmatprep.mubr.f32.mxu0 %v4110_v42 }
 0x236   : > { %2595 = vmatmul.mubr.f32.gmra.mrb[8].mxu0 %v4115_v43 }
 0x237   : > { %2597 = vmatprep.mubr.f32.mxu0 %v4118_v44 }
 0x23a   : > { %2598 = vmatmul.mubr.f32.gmra.mrb[10].mxu0 %v4123_v45 }
 0x23b   : > { %2600 = vmatprep.mubr.f32.mxu0 %v4126_v46 }
 0x23e   : > { %2601 = vmatmul.mubr.f32.gmra.mrb[12].mxu0 %v4131_v47 }
 0x23f   : > { %2603 = vmatprep.mubr.f32.mxu0 %v4134_v48 }
 0x242   : > { %2604 = vmatmul.mubr.f32.gmra.mrb[14].mxu0 %v4139_v49 }
 0x243   : > { %2694 = vmatprep.mubr.f32.mxu0 %v983_v50  ;;  %v828_v50 = vld [vmem:[#allocation14 + $0x30] sm:$0xff] }
 0x2f9   : > { %v2584_v51 = vpop.f32.mrb[0].mxu0 }
 0x2fa   : > { %v743_v52 = vpop.f32.mrb[1].mxu0 }
 0x2fb   : > { %v2926_v53 = vpack.c.bf16 %v2584_v51, %v743_v52  ;;  %v829_v51 = vld [vmem:[#allocation14 + $0x38] sm:$0xff] }
 0x2fc   : > { %v2906_v52 = vpack.c.bf16 %v829_v51, %v828_v50  ;;  %v4235_v50 = vld [vmem:[#allocation3 + $0x28] sm:$0xff] }
 0x2fd   : > { %2927 = vmatprep.subr.bf16.mxu0 %v2926_v53  ;;  %v2587_v54 = vpop.f32.mrb[2].mxu0 }
 0x2fe   : > { %2929 = vmatpush3.bf16.xpose.msra.mxu0 %v2926_v53  ;;  %v753_v55 = vpop.f32.mrb[3].mxu0  ;;  %2907 = vmatprep.subr.bf16.mxu1 %v2906_v52  ;;  %v830_v53 = vld [vmem:[#allocation14 + $0x40] sm:$0xff] }
 0x2ff   : > { %v2930_v56 = vpack.c.bf16 %v2587_v54, %v753_v55  ;;  %2909 = vmatpush3.bf16.msra.mxu1 %v2906_v52  ;;  %v831_v54 = vld [vmem:[#allocation14 + $0x48] sm:$0xff]  ;;  %v4242_v52 = vld [vmem:[#allocation3 + $0x30] sm:$0xff] }
 0x300   : > { %v2910_v55 = vpack.c.bf16 %v831_v54, %v830_v53 }
 0x301   : > { %2931 = vmatprep.subr.bf16.mxu0 %v2930_v56  ;;  %v2590_v57 = vpop.f32.mrb[4].mxu0 }
 0x302   : > { %v763_v58 = vpop.f32.mrb[5].mxu0  ;;  %2911 = vmatprep.subr.bf16.mxu1 %v2910_v55 }
 0x303   : > { %v2934_v59 = vpack.c.bf16 %v2590_v57, %v763_v58  ;;  %2913 = vmatpush3.bf16.msra.mxu1 %v2910_v55  ;;  %v833_v57 = vld [vmem:[#allocation14 + $0x58] sm:$0xff] }
 0x305   : > { %v2593_v60 = vpop.f32.mrb[6].mxu0 }
 0x306   : > { %2933 = vmatpush3.bf16.xpose.msra.mxu0 %v2930_v56  ;;  %v773_v61 = vpop.f32.mrb[7].mxu0  ;;  %v832_v56 = vld [vmem:[#allocation14 + $0x50] sm:$0xff] }
 0x307   : > { %2935 = vmatprep.subr.bf16.mxu0 %v2934_v59  ;;  %v2938_v62 = vpack.c.bf16 %v2593_v60, %v773_v61  ;;  %v2914_v58 = vpack.c.bf16 %v833_v57, %v832_v56  ;;  %v835_v60 = vld [vmem:[#allocation14 + $0x68] sm:$0xff]  ;;  %v836_v61 = vld [vmem:[#allocation14 + $0x70] sm:$0xff] }
 0x309   : > { %v2596_v63 = vpop.f32.mrb[8].mxu0  ;;  %2915 = vmatprep.subr.bf16.mxu1 %v2914_v58 }
 0x30a   : > { %v783_v0 = vpop.f32.mrb[9].mxu0  ;;  %2917 = vmatpush3.bf16.msra.mxu1 %v2914_v58 }
 0x30b   : > { %v2942_v1 = vpack.c.bf16 %v2596_v63, %v783_v0  ;;  %v837_v63 = vld [vmem:[#allocation14 + $0x78] sm:$0xff] }
 0x30c   : > { %v2922_v0 = vpack.c.bf16 %v837_v63, %v836_v61  ;;  %v4254_v61 = vld [vmem:[#allocation3 + $0x40] sm:$0xff] }
 0x30d   : > { %v2599_v2 = vpop.f32.mrb[10].mxu0 }
 0x30e   : > { %2937 = vmatpush3.bf16.xpose.msra.mxu0 %v2934_v59  ;;  %v793_v3 = vpop.f32.mrb[11].mxu0  ;;  %v834_v59 = vld [vmem:[#allocation14 + $0x60] sm:$0xff] }
 0x30f   : > { %2939 = vmatprep.subr.bf16.mxu0 %v2938_v62  ;;  %v2946_v4 = vpack.c.bf16 %v2599_v2, %v793_v3 }
 0x311   : > { %v2602_v5 = vpop.f32.mrb[12].mxu0 }
 0x312   : > { %v803_v6 = vpop.f32.mrb[13].mxu0 }
 0x313   : > { %v2950_v7 = vpack.c.bf16 %v2602_v5, %v803_v6 }
 0x315   : > { %v2605_v8 = vpop.f32.mrb[14].mxu0 }
 0x316   : > { %2941 = vmatpush3.bf16.xpose.msra.mxu0 %v2938_v62  ;;  %v813_v9 = vpop.f32.mrb[15].mxu0  ;;  %v2918_v62 = vpack.c.bf16 %v835_v60, %v834_v59  ;;  %v4248_v59 = vld [vmem:[#allocation3 + $0x38] sm:$0xff] }
 0x317   : > { %2943 = vmatprep.subr.bf16.mxu0 %v2942_v1  ;;  %v2954_v10 = vpack.c.bf16 %v2605_v8, %v813_v9 }
 0x318   : > { %2919 = vmatprep.subr.bf16.mxu1 %v2918_v62 }
 0x319   : > { %2921 = vmatpush3.bf16.msra.mxu1 %v2918_v62 }
 0x31a   : > { %2923 = vmatprep.subr.bf16.mxu1 %v2922_v0 }
 0x31d   : > { %2925 = vmatpush3.bf16.msra.mxu1 %v2922_v0 }
 0x31e   : > { %2945 = vmatpush3.bf16.xpose.msra.mxu0 %v2942_v1 }
 0x31f   : > { %2947 = vmatprep.subr.bf16.mxu0 %v2946_v4 }
 0x320   : > { %2639 = vmatmul.mubr.f32.vlgmr.msra.gmra.mrb[0].mxu1 %v4083_v35 }
 0x321   : > { %2641 = vmatprep.mubr.f32.mxu1 %v4086_v36 }
 0x324   : > { %2642 = vmatmul.mubr.f32.gmra.mrb[2].mxu1 %v4091_v37 }
 0x325   : > { %2644 = vmatprep.mubr.f32.mxu1 %v4094_v38 }
 0x326   : > { %2949 = vmatpush3.bf16.xpose.msra.mxu0 %v2946_v4 }
 0x327   : > { %2951 = vmatprep.subr.bf16.mxu0 %v2950_v7 }
 0x328   : > { %2645 = vmatmul.mubr.f32.gmra.mrb[4].mxu1 %v4099_v39 }
 0x329   : > { %2647 = vmatprep.mubr.f32.mxu1 %v4102_v40 }
 0x32c   : > { %2648 = vmatmul.mubr.f32.gmra.mrb[6].mxu1 %v4107_v41 }
 0x32d   : > { %2650 = vmatprep.mubr.f32.mxu1 %v4110_v42 }
 0x32e   : > { %2953 = vmatpush3.bf16.xpose.msra.mxu0 %v2950_v7 }
 0x32f   : > { %2955 = vmatprep.subr.bf16.mxu0 %v2954_v10 }
 0x330   : > { %2651 = vmatmul.mubr.f32.gmra.mrb[8].mxu1 %v4115_v43 }
 0x331   : > { %2653 = vmatprep.mubr.f32.mxu1 %v4118_v44 }
 0x334   : > { %2654 = vmatmul.mubr.f32.gmra.mrb[10].mxu1 %v4123_v45  ;;  %v3632_v45 = vmov 0  }
 0x335   : > { %2656 = vmatprep.mubr.f32.mxu1 %v4126_v46  ;;  %3210 = vset.pattern.permute.xlu0 %v3632_v45 }
 0x336   : > { %2957 = vmatpush3.bf16.xpose.msra.mxu0 %v2954_v10  ;;  %3211 = vset.pattern.permute.xlu1 %v3632_v45 }
 0x338   : > { %2657 = vmatmul.mubr.f32.gmra.mrb[12].mxu1 %v4131_v47 }
 0x339   : > { %2659 = vmatprep.mubr.f32.mxu1 %v4134_v48 }
 0x33c   : > { %2660 = vmatmul.mubr.f32.gmra.mrb[14].mxu1 %v4139_v49 }
 0x33d   : > { %2695 = vmatmul.mubr.f32.vlgmr.msra.gmra.mrb[16].mxu0 %v984_v11 }
 0x33e   : > { %2697 = vmatprep.mubr.f32.mxu0 %v985_v12  ;;  %v4205_v12 = vld [vmem:[#allocation3] sm:$0xff] }
 0x341   : > { %2698 = vmatmul.mubr.f32.gmra.mrb[18].mxu0 %v986_v13 }
 0x342   : > { %2700 = vmatprep.mubr.f32.mxu0 %v987_v14 }
 0x345   : > { %2701 = vmatmul.mubr.f32.gmra.mrb[20].mxu0 %v988_v15 }
 0x346   : > { %2703 = vmatprep.mubr.f32.mxu0 %v989_v16 }
 0x349   : > { %2704 = vmatmul.mubr.f32.gmra.mrb[22].mxu0 %v990_v17 }
 0x34a   : > { %2706 = vmatprep.mubr.f32.mxu0 %v991_v18  ;;  %v4210_v18 = vld [vmem:[#allocation3 + $0x18] sm:$0xff] }
 0x34d   : > { %2707 = vmatmul.mubr.f32.gmra.mrb[24].mxu0 %v992_v19  ;;  %v4212_v19 = vld [vmem:[#allocation3 + $0x8] sm:$0xff] }
 0x34e   : > { %2709 = vmatprep.mubr.f32.mxu0 %v993_v20 }
 0x351   : > { %2710 = vmatmul.mubr.f32.gmra.mrb[26].mxu0 %v994_v21 }
 0x352   : > { %2712 = vmatprep.mubr.f32.mxu0 %v995_v22 }
 0x355   : > { %2713 = vmatmul.mubr.f32.gmra.mrb[28].mxu0 %v996_v23 }
 0x356   : > { %2715 = vmatprep.mubr.f32.mxu0 %v997_v24 }
 0x359   : > { %2716 = vmatmul.mubr.f32.gmra.mrb[30].mxu0 %v998_v25 }
 0x3f3   : > { %v2640_v3 = vpop.f32.mrb[0].mxu1 }
 0x3f4   : > { %v904_v4 = vpop.f32.mrb[1].mxu1 }
 0x3f5   : > { %v2958_v5 = vpack.c.bf16 %v2640_v3, %v904_v4 }
 0x3f7   : > { %v2643_v6 = vpop.f32.mrb[2].mxu1  ;;  %2959 = vmatprep.subr.bf16.mxu1 %v2958_v5 }
 0x3f8   : > { %v914_v7 = vpop.f32.mrb[3].mxu1  ;;  %2961 = vmatpush3.bf16.msra.mxu1 %v2958_v5  ;;  %v1153_v5 = vld [vmem:[#allocation3 + $0x48] sm:$0xff] }
 0x3f9   : > { %v2962_v8 = vpack.c.bf16 %v2643_v6, %v914_v7  ;;  %v4264_v7 = vld [vmem:[#allocation3 + $0x50] sm:$0xff] }
 0x3fb   : > { %v2646_v9 = vpop.f32.mrb[4].mxu1  ;;  %2963 = vmatprep.subr.bf16.mxu1 %v2962_v8 }
 0x3fc   : > { %v924_v10 = vpop.f32.mrb[5].mxu1  ;;  %2965 = vmatpush3.bf16.msra.mxu1 %v2962_v8 }
 0x3fd   : > { %v2966_v11 = vpack.c.bf16 %v2646_v9, %v924_v10 }
 0x3ff   : > { %v2649_v13 = vpop.f32.mrb[6].mxu1  ;;  %2967 = vmatprep.subr.bf16.mxu1 %v2966_v11 }
 0x400   : > { %v934_v14 = vpop.f32.mrb[7].mxu1  ;;  %2969 = vmatpush3.bf16.msra.mxu1 %v2966_v11 }
 0x401   : > { %v2970_v16 = vpack.c.bf16 %v2649_v13, %v934_v14  ;;  %v1155_v13 = vld [vmem:[#allocation3 + $0x58] sm:$0xff] }
 0x403   : > { %v2652_v20 = vpop.f32.mrb[8].mxu1  ;;  %2971 = vmatprep.subr.bf16.mxu1 %v2970_v16 }
 0x404   : > { %v944_v22 = vpop.f32.mrb[9].mxu1  ;;  %2973 = vmatpush3.bf16.msra.mxu1 %v2970_v16 }
 0x405   : > { %v2974_v25 = vpack.c.bf16 %v2652_v20, %v944_v22  ;;  %v1157_v22 = vld [vmem:[#allocation3 + $0x68] sm:$0xff] }
 0x407   : > { %v2655_v29 = vpop.f32.mrb[10].mxu1  ;;  %2975 = vmatprep.subr.bf16.mxu1 %v2974_v25 }
 0x408   : > { %v954_v31 = vpop.f32.mrb[11].mxu1  ;;  %2977 = vmatpush3.bf16.msra.mxu1 %v2974_v25  ;;  %v4285_v25 = vld [vmem:[#allocation3 + $0x70] sm:$0xff] }
 0x409   : > { %v2978_v34 = vpack.c.bf16 %v2655_v29, %v954_v31 }
 0x40b   : > { %v2658_v53 = vpop.f32.mrb[12].mxu1  ;;  %2979 = vmatprep.subr.bf16.mxu1 %v2978_v34 }
 0x40c   : > { %v964_v55 = vpop.f32.mrb[13].mxu1  ;;  %2981 = vmatpush3.bf16.msra.mxu1 %v2978_v34 }
 0x40d   : > { %v2982_v58 = vpack.c.bf16 %v2658_v53, %v964_v55 }
 0x40f   : > { %v2661_v62 = vpop.f32.mrb[14].mxu1  ;;  %2983 = vmatprep.subr.bf16.mxu1 %v2982_v58 }
 0x410   : > { %v4157_v35 = vpop.f32.mrb[16].mxu0  ;;  %v974_v0 = vpop.f32.mrb[15].mxu1  ;;  %2985 = vmatpush3.bf16.msra.mxu1 %v2982_v58 }
 0x411   : > { %v4159_v36 = vpop.f32.mrb[17].mxu0  ;;  %v2986_v4 = vpack.c.bf16 %v2661_v62, %v974_v0 }
 0x412   : > { %1160 = vmax.xlane.f32.xlu0 %v4159_v36 }
 0x413   : > { %2987 = vmatprep.subr.bf16.mxu1 %v2986_v4 }
 0x414   : > { %v4162_v37 = vpop.f32.mrb[18].mxu0  ;;  %2989 = vmatpush3.bf16.msra.mxu1 %v2986_v4 }
 0x415   : > { %1166 = vmax.xlane.f32.xlu1 %v4162_v37  ;;  %v4165_v38 = vpop.f32.mrb[19].mxu0 }
 0x416   : > { %1162 = vmax.xlane.f32.xlu0 %v4157_v35 }
 0x418   : > { %v4168_v39 = vpop.f32.mrb[20].mxu0 }
 0x419   : > { %1164 = vmax.xlane.f32.xlu1 %v4165_v38  ;;  %v4171_v40 = vpop.f32.mrb[21].mxu0 }
 0x41a   : > { %1168 = vmax.xlane.f32.xlu0 %v4171_v40 }
 0x41c   : > { %v4174_v41 = vpop.f32.mrb[22].mxu0 }
 0x41d   : > { %1170 = vmax.xlane.f32.xlu1 %v4168_v39  ;;  %v4177_v42 = vpop.f32.mrb[23].mxu0 }
 0x41e   : > { %1172 = vmax.xlane.f32.xlu0 %v4177_v42 }
 0x420   : > { %v4180_v43 = vpop.f32.mrb[24].mxu0 }
 0x421   : > { %1174 = vmax.xlane.f32.xlu1 %v4174_v41  ;;  %v4183_v44 = vpop.f32.mrb[25].mxu0 }
 0x422   : > { %1176 = vmax.xlane.f32.xlu0 %v4183_v44 }
 0x424   : > { %v4186_v46 = vpop.f32.mrb[26].mxu0 }
 0x425   : > { %1178 = vmax.xlane.f32.xlu1 %v4180_v43  ;;  %v4189_v47 = vpop.f32.mrb[27].mxu0 }
 0x426   : > { %1180 = vmax.xlane.f32.xlu0 %v4189_v47 }
 0x428   : > { %v4192_v48 = vpop.f32.mrb[28].mxu0 }
 0x429   : > { %1182 = vmax.xlane.f32.xlu1 %v4186_v46  ;;  %v4195_v49 = vpop.f32.mrb[29].mxu0 }
 0x42a   : > { %1184 = vmax.xlane.f32.xlu0 %v4195_v49 }
 0x42c   : > { %v4198_v1 = vpop.f32.mrb[30].mxu0 }
 0x42d   : > { %1186 = vmax.xlane.f32.xlu1 %v4192_v48  ;;  %v4201_v2 = vpop.f32.mrb[31].mxu0 }
 0x42e   : > { %1188 = vmax.xlane.f32.xlu0 %v4201_v2 }
 0x431   : > { %1190 = vmax.xlane.f32.xlu1 %v4198_v1 }
 0x49f   : > { %v1161_v15 = vpop.xlane.xlu0 %1160 }
 0x4a0   : > { %v4208_v17 = vmax.f32 %v4205_v12, %v1161_v15  ;;  %v4274_v15 = vld [vmem:[#allocation3 + $0x60] sm:$0xff] }
 0x4a2   : > { %1770 = vst.msk [vmem:[#allocation3] sm:$0xff] %vm1464_vm1, %v4208_v17  ;;  %v1167_v21 = vpop.xlane.xlu1 %1166  ;;  %1258 = vperm.xlu0 %3210, %v4208_v17   ;;  %v1208_v8 = vsub.f32 %v4205_v12, %v4208_v17 }
 0x4a3   : > { %v4218_v23 = vmax.f32 %v4210_v18, %v1167_v21  ;;  %v1163_v24 = vpop.xlane.xlu0 %1162 }
 0x4a4   : > { %v4221_v26 = vmax.f32 %v4212_v19, %v1163_v24  ;;  %v1224_v16 = vmul.f32 1.442695, %v1208_v8 }
 0x4a5   : > { %1773 = vst.msk [vmem:[#allocation3 + $0x18] sm:$0xff] %vm1464_vm1, %v4218_v23  ;;  %v1211_v12 = vsub.f32 %v4210_v18, %v4218_v23 }
 0x4a6   : > { %1771 = vst.msk [vmem:[#allocation3 + $0x8] sm:$0xff] %vm1464_vm1, %v4221_v26  ;;  %v1165_v30 = vpop.xlane.xlu1 %1164  ;;  %1263 = vperm.xlu1 %3211, %v4221_v26   ;;  %3212 = vpow2.f32 %v1224_v16 }
 0x4a7   : > { %v4233_v32 = vmax.f32 %v4223_v27, %v1165_v30  ;;  %v1169_v33 = vpop.xlane.xlu0 %1168  ;;  %v1230_v29 = vmul.f32 1.442695, %v1211_v12 }
 0x4a8   : > { %v4238_v51 = vmax.f32 %v4227_v28, %v1169_v33  ;;  %v4290_v33 = vld [vmem:[#allocation3 + $0x78] sm:$0xff] }
 0x4a9   : > { %1772 = vst.msk [vmem:[#allocation3 + $0x10] sm:$0xff] %vm1464_vm1, %v4233_v32  ;;  %3214 = vpow2.f32 %v1230_v29 }
 0x4aa   : > { %v1171_v54 = vpop.xlane.xlu1 %1170  ;;  %1273 = vperm.xlu1 %3211, %v4218_v23   ;;  %1774 = vst.msk [vmem:[#allocation3 + $0x20] sm:$0xff] %vm1464_vm1, %v4238_v51  ;;  %v1212_v4 = vsub.f32 %v4227_v28, %v4238_v51 }
 0x4ab   : > { %v1197_v56 = vmax.f32 %v4235_v50, %v1171_v54  ;;  %v1173_v57 = vpop.xlane.xlu0 %1172 }
 0x4ac   : > { %v4251_v60 = vmax.f32 %v4242_v52, %v1173_v57  ;;  %v1232_v8 = vmul.f32 1.442695, %v1212_v4 }
 0x4ad   : > { %1775 = vst.msk [vmem:[#allocation3 + $0x28] sm:$0xff] %vm1464_vm1, %v1197_v56  ;;  %v1213_v18 = vsub.f32 %v4235_v50, %v1197_v56 }
 0x4ae   : > { %v1175_v63 = vpop.xlane.xlu1 %1174  ;;  %1268 = vperm.xlu1 %3211, %v4233_v32   ;;  %1776 = vst.msk [vmem:[#allocation3 + $0x30] sm:$0xff] %vm1464_vm1, %v4251_v60 }
 0x4af   : > { %v1199_v45 = vmax.f32 %v4248_v59, %v1175_v63  ;;  %v1177_v3 = vpop.xlane.xlu0 %1176  ;;  %v1234_v53 = vmul.f32 1.442695, %v1213_v18 }
 0x4b0   : > { %v4261_v6 = vmax.f32 %v4254_v61, %v1177_v3 }
 0x4b1   : > { %1777 = vst.msk [vmem:[#allocation3 + $0x38] sm:$0xff] %vm1464_vm1, %v1199_v45  ;;  %v1215_v54 = vsub.f32 %v4248_v59, %v1199_v45  ;;  %3216 = vpow2.f32 %v1234_v53 }
 0x4b2   : > { %v1179_v9 = vpop.xlane.xlu1 %1178  ;;  %1283 = vperm.xlu1 %3211, %v1197_v56   ;;  %1778 = vst.msk [vmem:[#allocation3 + $0x40] sm:$0xff] %vm1464_vm1, %v4261_v6  ;;  %v1209_v56 = vsub.f32 %v4212_v19, %v4221_v26  ;;  %v1210_v19 = vsub.f32 %v4223_v27, %v4233_v32  ;;  %v4315_v26 = vpop.eup %3212 }
 0x4b3   : > { %v1201_v10 = vmax.f32 %v1153_v5, %v1179_v9  ;;  %v1181_v11 = vpop.xlane.xlu0 %1180  ;;  %v1238_v59 = vmul.f32 1.442695, %v1215_v54  ;;  %v1214_v9 = vsub.f32 %v4242_v52, %v4251_v60 }
 0x4b4   : > { %v4271_v14 = vmax.f32 %v4264_v7, %v1181_v11  ;;  %v1226_v63 = vmul.f32 1.442695, %v1209_v56  ;;  %v1228_v3 = vmul.f32 1.442695, %v1210_v19  ;;  %v1216_v11 = vsub.f32 %v4254_v61, %v4261_v6 }
 0x4b5   : > { %1779 = vst.msk [vmem:[#allocation3 + $0x48] sm:$0xff] %vm1464_vm1, %v1201_v10  ;;  %1303 = vperm.xlu0 %3210, %v1201_v10   ;;  %v1217_v62 = vsub.f32 %v1153_v5, %v1201_v10  ;;  %3218 = vpow2.f32 %v1238_v59  ;;  %v4321_v5 = vpop.eup %3214 }
 0x4b6   : > { %v1183_v17 = vpop.xlane.xlu1 %1182  ;;  %1278 = vperm.xlu1 %3211, %v4238_v51   ;;  %1780 = vst.msk [vmem:[#allocation3 + $0x50] sm:$0xff] %vm1464_vm1, %v4271_v14  ;;  %3220 = vpow2.f32 %v1226_v63  ;;  %v1236_v51 = vmul.f32 1.442695, %v1214_v9  ;;  %v1240_v52 = vmul.f32 1.442695, %v1216_v11 }
 0x4b7   : > { %v1203_v20 = vmax.f32 %v1155_v13, %v1183_v17  ;;  %v1185_v21 = vpop.xlane.xlu0 %1184  ;;  %v1242_v0 = vmul.f32 1.442695, %v1217_v62 }
 0x4b8   : > { %v4282_v24 = vmax.f32 %v4274_v15, %v1185_v21 }
 0x4b9   : > { %1781 = vst.msk [vmem:[#allocation3 + $0x58] sm:$0xff] %vm1464_vm1, %v1203_v20  ;;  %1313 = vperm.xlu0 %3210, %v1203_v20   ;;  %3222 = vpow2.f32 %v1242_v0 }
 0x4ba   : > { %v1187_v23 = vpop.xlane.xlu1 %1186  ;;  %1293 = vperm.xlu1 %3211, %v1199_v45   ;;  %1782 = vst.msk [vmem:[#allocation3 + $0x60] sm:$0xff] %vm1464_vm1, %v4282_v24  ;;  %v1219_v45 = vsub.f32 %v1155_v13, %v1203_v20  ;;  %3224 = vpow2.f32 %v1228_v3 }
 0x4bb   : > { %v1205_v30 = vmax.f32 %v1157_v22, %v1187_v23  ;;  %v1189_v31 = vpop.xlane.xlu0 %1188  ;;  %v4327_v10 = vpop.eup %3216 }
 0x4bc   : > { %v4293_v34 = vmax.f32 %v4285_v25, %v1189_v31  ;;  %v1246_v27 = vmul.f32 1.442695, %v1219_v45 }
 0x4bd   : > { %1783 = vst.msk [vmem:[#allocation3 + $0x68] sm:$0xff] %vm1464_vm1, %v1205_v30  ;;  %1323 = vperm.xlu0 %3210, %v1205_v30   ;;  %v1221_v32 = vsub.f32 %v1157_v22, %v1205_v30 }
 0x4be   : > { %1288 = vperm.xlu1 %3211, %v4251_v60   ;;  %v1191_v50 = vpop.xlane.xlu1 %1190  ;;  %v1222_v55 = vsub.f32 %v4285_v25, %v4293_v34  ;;  %1784 = vst.msk [vmem:[#allocation3 + $0x70] sm:$0xff] %vm1464_vm1, %v4293_v34  ;;  %3226 = vpow2.f32 %v1246_v27  ;;  %v1218_v60 = vsub.f32 %v4264_v7, %v4271_v14 }
 0x4bf   : > { %v4305_v57 = vmax.f32 %v4290_v33, %v1191_v50  ;;  %v1250_v28 = vmul.f32 1.442695, %v1221_v32  ;;  %3228 = vpow2.f32 %v1232_v8  ;;  %v4333_v13 = vpop.eup %3218 }
 0x4c0   : > { %v4335_v16 = vpop.eup %3220  ;;  %v1244_v61 = vmul.f32 1.442695, %v1218_v60 }
 0x4c1   : > { %v1223_v58 = vsub.f32 %v4290_v33, %v4305_v57  ;;  %1785 = vst.msk [vmem:[#allocation3 + $0x78] sm:$0xff] %vm1464_vm1, %v4305_v57  ;;  %1333 = vperm.xlu0 %3210, %v4305_v57   ;;  %3230 = vpow2.f32 %v1250_v28 }
 0x4c2   : > { %1298 = vperm.xlu1 %3211, %v4261_v6   ;;  %3232 = vpow2.f32 %v1236_v51  ;;  %v1220_v6 = vsub.f32 %v4274_v15, %v4282_v24 }
 0x4c3   : > { %v4341_v12 = vpop.eup %3222  ;;  %3234 = vpow2.f32 %v1240_v52 }
 0x4c4   : > { %v4343_v17 = vpop.eup %3224  ;;  %3236 = vpow2.f32 %v1244_v61  ;;  %v1248_v7 = vmul.f32 1.442695, %v1220_v6 }
 0x4c5   : > { %1499 = vperm.xlu0 %3210, %v4315_v26  }
 0x4c6   : > { %1308 = vperm.xlu1 %3211, %v4271_v14   ;;  %3238 = vpow2.f32 %v1248_v7 }
 0x4c8   : > { %v4349_v20 = vpop.eup %3226 }
 0x4c9   : > { %1514 = vperm.xlu0 %3210, %v4321_v5   ;;  %v4351_v21 = vpop.eup %3228 }
 0x4ca   : > { %1318 = vperm.xlu1 %3211, %v4282_v24  }
 0x4cb   : > { %v4355_v14 = vpop.eup %3230 }
 0x4cc   : > { %v4357_v22 = vpop.eup %3232 }
 0x4cd   : > { %1524 = vperm.xlu0 %3210, %v4327_v10   ;;  %v4361_v15 = vpop.eup %3234 }
 0x4ce   : > { %1328 = vperm.xlu1 %3211, %v4293_v34   ;;  %v4364_v24 = vpop.eup %3236 }
 0x4d0   : > { %v4367_v29 = vpop.eup %3238 }
 0x4d1   : > { %1534 = vperm.xlu0 %3210, %v4333_v13  }
 0x4d2   : > { %1504 = vperm.xlu1 %3211, %v4335_v16  }
 0x4d5   : > { %1544 = vperm.xlu0 %3210, %v4341_v12  }
 0x4d6   : > { %1509 = vperm.xlu1 %3211, %v4343_v17  }
 0x4d9   : > { %1554 = vperm.xlu0 %3210, %v4349_v20  }
 0x4da   : > { %1519 = vperm.xlu1 %3211, %v4351_v21  }
 0x4dd   : > { %1564 = vperm.xlu0 %3210, %v4355_v14  }
 0x4de   : > { %1529 = vperm.xlu1 %3211, %v4357_v22  }
 0x4e2   : > { %1539 = vperm.xlu1 %3211, %v4361_v15  }
 0x4e6   : > { %1549 = vperm.xlu1 %3211, %v4364_v24  }
 0x4ea   : > { %1559 = vperm.xlu1 %3211, %v4367_v29  }
 0x521   : > { %v1259_v18 = vpop.permute.xlu0 %1258 }
 0x522   : > { %v1336_v23 = vsub.f32 %v4159_v36, %v1259_v18 }
 0x524   : > { %v1352_v30 = vmul.f32 1.442695, %v1336_v23 }
 0x525   : > { %v1264_v31 = vpop.permute.xlu1 %1263 }
 0x526   : > { %3240 = vpow2.f32 %v1352_v30  ;;  %v1337_v53 = vsub.f32 %v4157_v35, %v1264_v31 }
 0x528   : > { %v1354_v54 = vmul.f32 1.442695, %v1337_v53 }
 0x529   : > { %v1274_v50 = vpop.permute.xlu1 %1273 }
 0x52a   : > { %3242 = vpow2.f32 %v1354_v54  ;;  %v1339_v56 = vsub.f32 %v4162_v37, %v1274_v50 }
 0x52c   : > { %v1358_v59 = vmul.f32 1.442695, %v1339_v56 }
 0x52d   : > { %v1269_v62 = vpop.permute.xlu1 %1268 }
 0x52e   : > { %3244 = vpow2.f32 %v1358_v59  ;;  %v1338_v63 = vsub.f32 %v4165_v38, %v1269_v62 }
 0x530   : > { %v3241_v19 = vpop.eup %3240  ;;  %v1356_v0 = vmul.f32 1.442695, %v1338_v63 }
 0x531   : > { %v1284_v45 = vpop.permute.xlu1 %1283  ;;  %1416 = vadd.xlane.f32.xlu1 %v3241_v19  ;;  %2750 = vmatprep.mubr.f32.mxu1 %v3241_v19 }
 0x532   : > { %3246 = vpow2.f32 %v1356_v0  ;;  %v1341_v36 = vsub.f32 %v4168_v39, %v1284_v45 }
 0x534   : > { %v3243_v3 = vpop.eup %3242  ;;  %v1362_v35 = vmul.f32 1.442695, %v1341_v36  ;;  %v1304_v4 = vpop.permute.xlu0 %1303 }
 0x535   : > { %v1279_v27 = vpop.permute.xlu1 %1278  ;;  %1418 = vadd.xlane.f32.xlu0 %v3243_v3  ;;  %2751 = vmatmul.mubr.f32.vlgmr.msra.gmra.mrb[16].mxu1 %v3243_v3  ;;  %v1345_v51 = vsub.f32 %v4180_v43, %v1304_v4 }
 0x536   : > { %3248 = vpow2.f32 %v1362_v35  ;;  %v1340_v37 = vsub.f32 %v4171_v40, %v1279_v27 }
 0x537   : > { %v1370_v40 = vmul.f32 1.442695, %v1345_v51 }
 0x538   : > { %v3245_v32 = vpop.eup %3244  ;;  %v1360_v8 = vmul.f32 1.442695, %v1340_v37  ;;  %v1314_v38 = vpop.permute.xlu0 %1313 }
 0x539   : > { %v1294_v9 = vpop.permute.xlu1 %1293  ;;  %1422 = vadd.xlane.f32.xlu1 %v3245_v32  ;;  %v1347_v6 = vsub.f32 %v4186_v46, %v1314_v38 }
 0x53a   : > { %3250 = vpow2.f32 %v1360_v8  ;;  %v1343_v28 = vsub.f32 %v4174_v41, %v1294_v9  ;;  %v1254_v8 = vmul.f32 1.442695, %v1223_v58 }
 0x53b   : > { %v1374_v43 = vmul.f32 1.442695, %v1347_v6 }
 0x53c   : > { %v3247_v39 = vpop.eup %3246  ;;  %v1366_v11 = vmul.f32 1.442695, %v1343_v28  ;;  %v1324_v60 = vpop.permute.xlu0 %1323 }
 0x53d   : > { %v1289_v52 = vpop.permute.xlu1 %1288  ;;  %1420 = vadd.xlane.f32.xlu0 %v3247_v39  ;;  %2753 = vmatprep.mubr.f32.mxu1 %v3247_v39  ;;  %v1349_v30 = vsub.f32 %v4192_v48, %v1324_v60 }
 0x53e   : > { %3252 = vpow2.f32 %v1366_v11  ;;  %v1342_v61 = vsub.f32 %v4177_v42, %v1289_v52  ;;  %2754 = vmatmul.mubr.f32.gmra.mrb[18].mxu1 %v3245_v32  ;;  %v1252_v32 = vmul.f32 1.442695, %v1222_v55 }
 0x53f   : > { %v1378_v46 = vmul.f32 1.442695, %v1349_v30 }
 0x540   : > { %v3249_v7 = vpop.eup %3248  ;;  %v1364_v18 = vmul.f32 1.442695, %v1342_v61  ;;  %v1334_v53 = vpop.permute.xlu0 %1333 }
 0x541   : > { %v1299_v23 = vpop.permute.xlu1 %1298  ;;  %1426 = vadd.xlane.f32.xlu1 %v3249_v7  ;;  %v1351_v56 = vsub.f32 %v4198_v1, %v1334_v53 }
 0x542   : > { %3254 = vpow2.f32 %v1364_v18  ;;  %v1344_v41 = vsub.f32 %v4183_v44, %v1299_v23  ;;  %v1385_v23 = vld [vmem:[#allocation4 + $0x8] sm:$0xff] }
 0x543   : > { %3256 = vpow2.f32 %v1370_v40  ;;  %v1382_v63 = vmul.f32 1.442695, %v1351_v56  ;;  %v1384_v40 = vld [vmem:[#allocation4] sm:$0xff] }
 0x544   : > { %v3251_v31 = vpop.eup %3250  ;;  %v1368_v54 = vmul.f32 1.442695, %v1344_v41  ;;  %v4400_v25 = vpop.permute.xlu0 %1499  ;;  %v1400_v6 = vmul.f32 %v4315_v26, %v1384_v40  ;;  %v1394_v40 = vld [vmem:[#allocation4 + $0x50] sm:$0xff] }
 0x545   : > { %v1309_v50 = vpop.permute.xlu1 %1308  ;;  %1424 = vadd.xlane.f32.xlu0 %v3251_v31  ;;  %2756 = vmatprep.mubr.f32.mxu1 %v3251_v31  ;;  %v1387_v31 = vld [vmem:[#allocation4 + $0x18] sm:$0xff] }
 0x546   : > { %3258 = vpow2.f32 %v1368_v54  ;;  %v1346_v42 = vsub.f32 %v4189_v47, %v1309_v50  ;;  %2757 = vmatmul.mubr.f32.gmra.mrb[20].mxu1 %v3249_v7  ;;  %v1403_v54 = vmul.f32 %v4321_v5, %v1387_v31 }
 0x547   : > { %3260 = vpow2.f32 %v1374_v43  ;;  %v1401_v43 = vmul.f32 %v4335_v16, %v1385_v23  ;;  %v1410_v23 = vmul.f32 %v4364_v24, %v1394_v40  ;;  %v1398_v24 = vld [vmem:[#allocation4 + $0x70] sm:$0xff] }
 0x548   : > { %v3253_v59 = vpop.eup %3252  ;;  %v1372_v44 = vmul.f32 1.442695, %v1346_v42  ;;  %v4404_v55 = vpop.permute.xlu0 %1514  ;;  %v1386_v42 = vld [vmem:[#allocation4 + $0x10] sm:$0xff] }
 0x549   : > { %v1319_v62 = vpop.permute.xlu1 %1318  ;;  %1430 = vadd.xlane.f32.xlu1 %v3253_v59  ;;  %v1402_v26 = vmul.f32 %v4343_v17, %v1386_v42 }
 0x54a   : > { %3262 = vpow2.f32 %v1372_v44  ;;  %v1348_v48 = vsub.f32 %v4195_v49, %v1319_v62 }
 0x54b   : > { %3264 = vpow2.f32 %v1378_v46 }
 0x54c   : > { %v3255_v19 = vpop.eup %3254  ;;  %v1376_v0 = vmul.f32 1.442695, %v1348_v48  ;;  %v4408_v33 = vpop.permute.xlu0 %1524  ;;  %v1388_v48 = vld [vmem:[#allocation4 + $0x20] sm:$0xff] }
 0x54d   : > { %v3257_v45 = vpop.eup %3256  ;;  %1428 = vadd.xlane.f32.xlu0 %v3255_v19  ;;  %v1329_v36 = vpop.permute.xlu1 %1328  ;;  %2759 = vmatprep.mubr.f32.mxu1 %v3255_v19  ;;  %v1404_v5 = vmul.f32 %v4351_v21, %v1388_v48 }
 0x54e   : > { %3266 = vpow2.f32 %v1376_v0  ;;  %v1350_v47 = vsub.f32 %v4201_v2, %v1329_v36  ;;  %1434 = vadd.xlane.f32.xlu1 %v3257_v45  ;;  %2760 = vmatmul.mubr.f32.gmra.mrb[22].mxu1 %v3253_v59  ;;  %v1389_v59 = vld [vmem:[#allocation4 + $0x28] sm:$0xff]  ;;  %v1391_v0 = vld [vmem:[#allocation4 + $0x38] sm:$0xff] }
 0x54f   : > { %3268 = vpow2.f32 %v1382_v63  ;;  %v1405_v16 = vmul.f32 %v4327_v10, %v1389_v59  ;;  %v1407_v17 = vmul.f32 %v4333_v13, %v1391_v0  ;;  %v1484_v0 = vld [vmem:[#allocation5 + $0x18] sm:$0xff] }
 0x550   : > { %v3259_v1 = vpop.eup %3258  ;;  %v1380_v3 = vmul.f32 1.442695, %v1350_v47  ;;  %v4412_v58 = vpop.permute.xlu0 %1534  ;;  %v1390_v47 = vld [vmem:[#allocation4 + $0x30] sm:$0xff] }
 0x551   : > { %v3261_v35 = vpop.eup %3260  ;;  %1432 = vadd.xlane.f32.xlu0 %v3259_v1  ;;  %2762 = vmatprep.mubr.f32.mxu1 %v3259_v1  ;;  %v4398_v28 = vpop.permute.xlu1 %1504  ;;  %v1406_v10 = vmul.f32 %v4357_v22, %v1390_v47 }
 0x552   : > { %3270 = vpow2.f32 %v1380_v3  ;;  %1438 = vadd.xlane.f32.xlu1 %v3261_v35  ;;  %2763 = vmatmul.mubr.f32.gmra.mrb[24].mxu1 %v3257_v45  ;;  %v1393_v3 = vld [vmem:[#allocation4 + $0x48] sm:$0xff] }
 0x553   : > { %3272 = vpow2.f32 %v1252_v32 }
 0x554   : > { %v3263_v49 = vpop.eup %3262  ;;  %3274 = vpow2.f32 %v1254_v8  ;;  %v4416_v11 = vpop.permute.xlu0 %1544 }
 0x555   : > { %v3265_v4 = vpop.eup %3264  ;;  %1436 = vadd.xlane.f32.xlu0 %v3263_v49  ;;  %2765 = vmatprep.mubr.f32.mxu1 %v3263_v49  ;;  %v4402_v34 = vpop.permute.xlu1 %1509 }
 0x556   : > { %1442 = vadd.xlane.f32.xlu1 %v3265_v4  ;;  %2766 = vmatmul.mubr.f32.gmra.mrb[26].mxu1 %v3261_v35  ;;  %v1409_v35 = vmul.f32 %v4341_v12, %v1393_v3 }
 0x558   : > { %v3267_v27 = vpop.eup %3266  ;;  %v4420_v60 = vpop.permute.xlu0 %1554 }
 0x559   : > { %v3269_v37 = vpop.eup %3268  ;;  %1440 = vadd.xlane.f32.xlu0 %v3267_v27  ;;  %2768 = vmatprep.mubr.f32.mxu1 %v3267_v27  ;;  %v4406_v51 = vpop.permute.xlu1 %1519 }
 0x55a   : > { %1446 = vadd.xlane.f32.xlu1 %v3269_v37  ;;  %2769 = vmatmul.mubr.f32.gmra.mrb[28].mxu1 %v3265_v4  ;;  %v1392_v4 = vld [vmem:[#allocation4 + $0x40] sm:$0xff] }
 0x55b   : > { %v1408_v13 = vmul.f32 %v4361_v15, %v1392_v4  ;;  %v1396_v15 = vld [vmem:[#allocation4 + $0x60] sm:$0xff] }
 0x55c   : > { %v3271_v2 = vpop.eup %3270  ;;  %v4425_v7 = vpop.permute.xlu0 %1564 }
 0x55d   : > { %1444 = vadd.xlane.f32.xlu0 %v3271_v2  ;;  %2771 = vmatprep.mubr.f32.mxu1 %v3271_v2  ;;  %v4392_v38 = vpop.eup %3272  ;;  %v4410_v57 = vpop.permute.xlu1 %1529 }
 0x55e   : > { %2772 = vmatmul.mubr.f32.gmra.mrb[30].mxu1 %v3269_v37  ;;  %v4395_v9 = vpop.eup %3274  ;;  %v1395_v37 = vld [vmem:[#allocation4 + $0x58] sm:$0xff] }
 0x55f   : > { %v1411_v32 = vmul.f32 %v4349_v20, %v1395_v37 }
 0x561   : > { %v4414_v39 = vpop.permute.xlu1 %1539 }
 0x565   : > { %v4418_v52 = vpop.permute.xlu1 %1549 }
 0x569   : > { %v4422_v61 = vpop.permute.xlu1 %1559 }
 0x56b   : > { %1569 = vperm.xlu1 %3211, %v4392_v38  }
 0x573   : > { %1574 = vperm.xlu0 %3210, %v4395_v9  }
 0x5be   : > { %v1417_v18 = vpop.xlane.xlu1 %1416 }
 0x5bf   : > { %v1448_v41 = vadd.f32 %v1417_v18, %v1400_v6  ;;  %v1397_v18 = vld [vmem:[#allocation4 + $0x68] sm:$0xff] }
 0x5c1   : > { %1465 = vst.msk [vmem:[#allocation4] sm:$0xff] %vm1464_vm1, %v1448_v41  ;;  %v1413_v41 = vmul.f32 %v4355_v14, %v1397_v18  ;;  %v1414_v14 = vmul.f32 %v4392_v38, %v1398_v24  ;;  %v1483_v38 = vld [vmem:[#allocation5 + $0x10] sm:$0xff] }
 0x5c2   : > { %v1419_v30 = vpop.xlane.xlu0 %1418 }
 0x5c3   : > { %v1449_v53 = vadd.f32 %v1419_v30, %v1401_v43 }
 0x5c5   : > { %1466 = vst.msk [vmem:[#allocation4 + $0x8] sm:$0xff] %vm1464_vm1, %v1449_v53  ;;  %v1399_v53 = vld [vmem:[#allocation4 + $0x78] sm:$0xff] }
 0x5c6   : > { %v1423_v50 = vpop.xlane.xlu1 %1422 }
 0x5c7   : > { %v1451_v46 = vadd.f32 %v1423_v50, %v1403_v54  ;;  %v1412_v54 = vmul.f32 %v4367_v29, %v1396_v15  ;;  %v1415_v50 = vmul.f32 %v4395_v9, %v1399_v53  ;;  %v1482_v29 = vld [vmem:[#allocation5 + $0x8] sm:$0xff]  ;;  %v1493_v53 = vld [vmem:[#allocation5 + $0x60] sm:$0xff] }
 0x5c9   : > { %1468 = vst.msk [vmem:[#allocation4 + $0x18] sm:$0xff] %vm1464_vm1, %v1451_v46 }
 0x5ca   : > { %v1421_v56 = vpop.xlane.xlu0 %1420 }
 0x5cb   : > { %v1450_v44 = vadd.f32 %v1421_v56, %v1402_v26 }
 0x5cd   : > { %1467 = vst.msk [vmem:[#allocation4 + $0x10] sm:$0xff] %vm1464_vm1, %v1450_v44 }
 0x5ce   : > { %v1427_v62 = vpop.xlane.xlu1 %1426 }
 0x5cf   : > { %v1453_v63 = vadd.f32 %v1427_v62, %v1405_v16  ;;  %v1481_v16 = vld [vmem:[#allocation5] sm:$0xff]  ;;  %v1578_v62 = vmul.f32 %v4398_v28, %v1482_v29  ;;  %v1486_v28 = vld [vmem:[#allocation5 + $0x28] sm:$0xff] }
 0x5d0   : > { %v1577_v9 = vmul.f32 %v4400_v25, %v1481_v16  ;;  %v1485_v25 = vld [vmem:[#allocation5 + $0x20] sm:$0xff] }
 0x5d1   : > { %1470 = vst.msk [vmem:[#allocation4 + $0x28] sm:$0xff] %vm1464_vm1, %v1453_v63 }
 0x5d2   : > { %v1425_v19 = vpop.xlane.xlu0 %1424 }
 0x5d3   : > { %v1452_v45 = vadd.f32 %v1425_v19, %v1404_v5 }
 0x5d5   : > { %1469 = vst.msk [vmem:[#allocation4 + $0x20] sm:$0xff] %vm1464_vm1, %v1452_v45  ;;  %v1580_v45 = vmul.f32 %v4404_v55, %v1484_v0  ;;  %v1488_v55 = vld [vmem:[#allocation5 + $0x38] sm:$0xff]  ;;  %v1808_v0 = vld [vmem:[#allocation4 + $0x10] sm:$0xff] (!%p2293_p10) }
 0x5d6   : > { %v1431_v36 = vpop.xlane.xlu1 %1430  ;;  %v1584_v37 = vmul.f32 %v4412_v58, %v1488_v55 }
 0x5d7   : > { %v1455_v1 = vadd.f32 %v1431_v36, %v1407_v17  ;;  %v1579_v17 = vmul.f32 %v4402_v34, %v1483_v38  ;;  %v1487_v34 = vld [vmem:[#allocation5 + $0x30] sm:$0xff]  ;;  %v1934_v38 = vld [vmem:[#allocation15] sm:$0xff] (!%p2293_p10) }
 0x5d9   : > { %1472 = vst.msk [vmem:[#allocation4 + $0x38] sm:$0xff] %vm1464_vm1, %v1455_v1 }
 0x5da   : > { %v1429_v49 = vpop.xlane.xlu0 %1428 }
 0x5db   : > { %v1435_v21 = vpop.xlane.xlu1 %1434  ;;  %v1454_v27 = vadd.f32 %v1429_v49, %v1406_v10  ;;  %v1582_v10 = vmul.f32 %v4408_v33, %v1486_v28  ;;  %v1939_v28 = vld [vmem:[#allocation15 + $0x28] sm:$0xff] (!%p2293_p10) }
 0x5dc   : > { %v1457_v2 = vadd.f32 %v1435_v21, %v1409_v35  ;;  %v1581_v35 = vmul.f32 %v4406_v51, %v1485_v25 }
 0x5dd   : > { %1471 = vst.msk [vmem:[#allocation4 + $0x30] sm:$0xff] %vm1464_vm1, %v1454_v27 }
 0x5de   : > { %1474 = vst.msk [vmem:[#allocation4 + $0x48] sm:$0xff] %vm1464_vm1, %v1457_v2  ;;  %v1433_v8 = vpop.xlane.xlu0 %1432  ;;  %v1490_v2 = vld [vmem:[#allocation5 + $0x48] sm:$0xff] }
 0x5df   : > { %v1439_v6 = vpop.xlane.xlu1 %1438  ;;  %v1456_v22 = vadd.f32 %v1433_v8, %v1408_v13  ;;  %v1583_v13 = vmul.f32 %v4410_v57, %v1487_v34  ;;  %v1489_v8 = vld [vmem:[#allocation5 + $0x40] sm:$0xff]  ;;  %v1586_v51 = vmul.f32 %v4416_v11, %v1490_v2  ;;  %v1494_v57 = vld [vmem:[#allocation5 + $0x68] sm:$0xff] }
 0x5e0   : > { %v1459_v12 = vadd.f32 %v1439_v6, %v1411_v32  ;;  %v1585_v18 = vmul.f32 %v4414_v39, %v1489_v8  ;;  %v1590_v39 = vmul.f32 %v4425_v7, %v1494_v57  ;;  %v1943_v8 = vld [vmem:[#allocation15 + $0x48] sm:$0xff] (!%p2293_p10)  ;;  %v1946_v57 = vld [vmem:[#allocation15 + $0x60] sm:$0xff] (!%p2293_p10) }
 0x5e1   : > { %1473 = vst.msk [vmem:[#allocation4 + $0x40] sm:$0xff] %vm1464_vm1, %v1456_v22  ;;  %v1492_v22 = vld [vmem:[#allocation5 + $0x58] sm:$0xff] }
 0x5e2   : > { %1476 = vst.msk [vmem:[#allocation4 + $0x58] sm:$0xff] %vm1464_vm1, %v1459_v12  ;;  %v1437_v43 = vpop.xlane.xlu0 %1436  ;;  %v1588_v15 = vmul.f32 %v4420_v60, %v1492_v22  ;;  %v1495_v60 = vld [vmem:[#allocation5 + $0x70] sm:$0xff] }
 0x5e3   : > { %v1443_v30 = vpop.xlane.xlu1 %1442  ;;  %v1458_v31 = vadd.f32 %v1437_v43, %v1410_v23  ;;  %v1491_v23 = vld [vmem:[#allocation5 + $0x50] sm:$0xff] }
 0x5e4   : > { %v1461_v20 = vadd.f32 %v1443_v30, %v1413_v41  ;;  %v1587_v30 = vmul.f32 %v4418_v52, %v1491_v23 }
 0x5e5   : > { %1475 = vst.msk [vmem:[#allocation4 + $0x50] sm:$0xff] %vm1464_vm1, %v1458_v31 }
 0x5e6   : > { %1478 = vst.msk [vmem:[#allocation4 + $0x68] sm:$0xff] %vm1464_vm1, %v1461_v20  ;;  %v1441_v42 = vpop.xlane.xlu0 %1440 }
 0x5e7   : > { %v1447_v46 = vpop.xlane.xlu1 %1446  ;;  %v1460_v26 = vadd.f32 %v1441_v42, %v1412_v54  ;;  %v1496_v42 = vld [vmem:[#allocation5 + $0x78] sm:$0xff] }
 0x5e8   : > { %v1463_v56 = vadd.f32 %v1447_v46, %v1415_v50  ;;  %v1589_v50 = vmul.f32 %v4422_v61, %v1493_v53  ;;  %v1807_v61 = vld [vmem:[#allocation4 + $0x8] sm:$0xff] (!%p2293_p10) }
 0x5e9   : > { %1477 = vst.msk [vmem:[#allocation4 + $0x60] sm:$0xff] %vm1464_vm1, %v1460_v26  ;;  %3278 = vrcp.f32 (!%p2293_p10), %v1807_v61  ;;  %v1817_v25 = vld [vmem:[#allocation4 + $0x58] sm:$0xff] (!%p2293_p10) }
 0x5ea   : > { %1480 = vst.msk [vmem:[#allocation4 + $0x78] sm:$0xff] %vm1464_vm1, %v1463_v56  ;;  %v1445_v59 = vpop.xlane.xlu0 %1444 }
 0x5eb   : > { %v1462_v44 = vadd.f32 %v1445_v59, %v1414_v14  ;;  %v1570_v26 = vpop.permute.xlu1 %1569 }
 0x5ed   : > { %1479 = vst.msk [vmem:[#allocation4 + $0x70] sm:$0xff] %vm1464_vm1, %v1462_v44  ;;  %v1591_v44 = vmul.f32 %v1570_v26, %v1495_v60 }
 0x5f0   : > { %v1818_v55 = vld [vmem:[#allocation4 + $0x60] sm:$0xff] (!%p2293_p10) }
 0x5f2   : > { %v1575_v24 = vpop.permute.xlu0 %1574 }
 0x5f3   : > { %v1592_v59 = vmul.f32 %v1575_v24, %v1496_v42 }
 0x5f4   : > { %v1820_v23 = vld [vmem:[#allocation4 + $0x70] sm:$0xff] (!%p2293_p10) }
 0x608   : > { %v2752_v48 = vpop.f32.mrb[16].mxu1 }
 0x609   : > { %v1739_v63 = vadd.f32 %v2752_v48, %v1578_v62  ;;  %v1659_v5 = vpop.f32.mrb[17].mxu1  ;;  %v1815_v48 = vld [vmem:[#allocation4 + $0x48] sm:$0xff] (!%p2293_p10) }
 0x60a   : > { %v1738_v19 = vadd.f32 %v1659_v5, %v1577_v9  ;;  %v1806_v9 = vld [vmem:[#allocation4] sm:$0xff] (!%p2293_p10) }
 0x60b   : > { %1755 = vst [vmem:[#allocation5 + $0x8] sm:$0xff] %v1739_v63  ;;  %v3633_v63 = vmov (!%p2293_p10), 0   ;;  %v1814_v5 = vld [vmem:[#allocation4 + $0x40] sm:$0xff] (!%p2293_p10)  ;;  %3280 = vrcp.f32 (!%p2293_p10), %v1806_v9 }
 0x60c   : > { %1754 = vst [vmem:[#allocation5] sm:$0xff] %v1738_v19  ;;  %3277 = vset.pattern.permute.xlu1 (!%p2293_p10), %v3633_v63  ;;  %3276 = vset.pattern.permute.xlu0 (!%p2293_p10), %v3633_v63  ;;  %3282 = vrcp.f32 (!%p2293_p10), %v1815_v48  ;;  %v1816_v19 = vld [vmem:[#allocation4 + $0x50] sm:$0xff] (!%p2293_p10) }
 0x60d   : > { %3284 = vrcp.f32 (!%p2293_p10), %v1814_v5 }
 0x60e   : > { %3286 = vrcp.f32 (!%p2293_p10), %v1816_v19 }
 0x60f   : > { %3288 = vrcp.f32 (!%p2293_p10), %v1808_v0 }
 0x610   : > { %3290 = vrcp.f32 (!%p2293_p10), %v1817_v25 }
 0x611   : > { %v2755_v36 = vpop.f32.mrb[18].mxu1 }
 0x612   : > { %v1741_v47 = vadd.f32 %v2755_v36, %v1580_v45  ;;  %v1669_v1 = vpop.f32.mrb[19].mxu1  ;;  %v1935_v45 = vld [vmem:[#allocation15 + $0x8] sm:$0xff] (!%p2293_p10)  ;;  %v1936_v36 = vld [vmem:[#allocation15 + $0x10] sm:$0xff] (!%p2293_p10) }
 0x613   : > { %v1740_v3 = vadd.f32 %v1669_v1, %v1579_v17  ;;  %v2990_v17 = vpack.c.bf16 (!%p2293_p10), %v1935_v45, %v1934_v38 }
 0x614   : > { %1757 = vst [vmem:[#allocation5 + $0x18] sm:$0xff] %v1741_v47  ;;  %v1937_v47 = vld [vmem:[#allocation15 + $0x18] sm:$0xff] (!%p2293_p10) }
 0x615   : > { %1756 = vst [vmem:[#allocation5 + $0x10] sm:$0xff] %v1740_v3  ;;  %v2994_v1 = vpack.c.bf16 (!%p2293_p10), %v1937_v47, %v1936_v36  ;;  %v1938_v3 = vld [vmem:[#allocation15 + $0x20] sm:$0xff] (!%p2293_p10)  ;;  %2991 = vmatprep.subr.bf16.mxu0 (!%p2293_p10), %v2990_v17  ;;  %3038 = vmatprep.subr.bf16.mxu1 (!%p2293_p10), %v2990_v17 }
 0x616   : > { %2993 = vmatpush3.bf16.msra.mxu0 (!%p2293_p10), %v2990_v17  ;;  %3046 = vmatpush3.bf16.msra.mxu1 (!%p2293_p10), %v2990_v17 }
 0x617   : > { %2995 = vmatprep.subr.bf16.mxu0 (!%p2293_p10), %v2994_v1  ;;  %3039 = vmatprep.subr.bf16.mxu1 (!%p2293_p10), %v2994_v1 }
 0x619   : > { %v2758_v49 = vpop.f32.mrb[20].mxu1 }
 0x61a   : > { %v1743_v4 = vadd.f32 %v2758_v49, %v1582_v10  ;;  %v1679_v21 = vpop.f32.mrb[21].mxu1  ;;  %v1809_v10 = vld [vmem:[#allocation4 + $0x18] sm:$0xff] (!%p2293_p10)  ;;  %v3279_v49 = vpop.eup (!%p2293_p10), %3278  ;;  %2997 = vmatpush3.bf16.msra.mxu0 (!%p2293_p10), %v2994_v1  ;;  %3047 = vmatpush3.bf16.msra.mxu1 (!%p2293_p10), %v2994_v1 }
 0x61b   : > { %v1742_v27 = vadd.f32 %v1679_v21, %v1581_v35  ;;  %v2998_v35 = vpack.c.bf16 (!%p2293_p10), %v1939_v28, %v1938_v3  ;;  %v1941_v21 = vld [vmem:[#allocation15 + $0x38] sm:$0xff] (!%p2293_p10)  ;;  %1845 = vperm.xlu1 (!%p2293_p10), %3277, %v3279_v49   ;;  %3292 = vrcp.f32 (!%p2293_p10), %v1809_v10 }
 0x61c   : > { %1759 = vst [vmem:[#allocation5 + $0x28] sm:$0xff] %v1743_v4  ;;  %v1940_v4 = vld [vmem:[#allocation15 + $0x30] sm:$0xff] (!%p2293_p10)  ;;  %3294 = vrcp.f32 (!%p2293_p10), %v1818_v55  ;;  %v1793_v1 = vld [vmem:[#allocation5 + $0x18] sm:$0xff] (!%p2293_p10) }
 0x61d   : > { %1758 = vst [vmem:[#allocation5 + $0x20] sm:$0xff] %v1742_v27  ;;  %v3281_v27 = vpop.eup (!%p2293_p10), %3280  ;;  %2999 = vmatprep.subr.bf16.mxu0 (!%p2293_p10), %v2998_v35  ;;  %3040 = vmatprep.subr.bf16.mxu1 (!%p2293_p10), %v2998_v35  ;;  %v1792_v0 = vld [vmem:[#allocation5 + $0x10] sm:$0xff] (!%p2293_p10) }
 0x61e   : > { %v3283_v34 = vpop.eup (!%p2293_p10), %3282  ;;  %1840 = vperm.xlu0 (!%p2293_p10), %3276, %v3281_v27   ;;  %3001 = vmatpush3.bf16.msra.mxu0 (!%p2293_p10), %v2998_v35 }
 0x61f   : > { %v3285_v2 = vpop.eup (!%p2293_p10), %3284  ;;  %1885 = vperm.xlu1 (!%p2293_p10), %3277, %v3283_v34   ;;  %3048 = vmatpush3.bf16.msra.mxu1 (!%p2293_p10), %v2998_v35 }
 0x621   : > { %v2761_v32 = vpop.f32.mrb[22].mxu1 }
 0x622   : > { %v1745_v40 = vadd.f32 %v2761_v32, %v1584_v37  ;;  %v1689_v6 = vpop.f32.mrb[23].mxu1  ;;  %v1810_v37 = vld [vmem:[#allocation4 + $0x20] sm:$0xff] (!%p2293_p10)  ;;  %1880 = vperm.xlu0 (!%p2293_p10), %3276, %v3285_v2  }
 0x623   : > { %v1744_v33 = vadd.f32 %v1689_v6, %v1583_v13  ;;  %v3002_v13 = vpack.c.bf16 (!%p2293_p10), %v1941_v21, %v1940_v4  ;;  %v1942_v32 = vld [vmem:[#allocation15 + $0x40] sm:$0xff] (!%p2293_p10)  ;;  %3296 = vrcp.f32 (!%p2293_p10), %v1810_v37  ;;  %v3287_v6 = vpop.eup (!%p2293_p10), %3286  ;;  %v1795_v37 = vld [vmem:[#allocation5 + $0x28] sm:$0xff] (!%p2293_p10) }
 0x624   : > { %1761 = vst [vmem:[#allocation5 + $0x38] sm:$0xff] %v1745_v40  ;;  %v1819_v40 = vld [vmem:[#allocation4 + $0x68] sm:$0xff] (!%p2293_p10)  ;;  %v3006_v22 = vpack.c.bf16 (!%p2293_p10), %v1943_v8, %v1942_v32  ;;  %1890 = vperm.xlu1 (!%p2293_p10), %3277, %v3287_v6   ;;  %v1794_v49 = vld [vmem:[#allocation5 + $0x20] sm:$0xff] (!%p2293_p10) }
 0x625   : > { %1760 = vst [vmem:[#allocation5 + $0x30] sm:$0xff] %v1744_v33  ;;  %v2764_v12 = vpop.f32.mrb[24].mxu1  ;;  %v1811_v33 = vld [vmem:[#allocation4 + $0x28] sm:$0xff] (!%p2293_p10)  ;;  %3003 = vmatprep.subr.bf16.mxu0 (!%p2293_p10), %v3002_v13  ;;  %3298 = vrcp.f32 (!%p2293_p10), %v1819_v40  ;;  %3041 = vmatprep.subr.bf16.mxu1 (!%p2293_p10), %v3002_v13 }
 0x626   : > { %v1747_v41 = vadd.f32 %v2764_v12, %v1586_v51  ;;  %v1699_v43 = vpop.f32.mrb[25].mxu1  ;;  %v3289_v51 = vpop.eup (!%p2293_p10), %3288  ;;  %v1945_v12 = vld [vmem:[#allocation15 + $0x58] sm:$0xff] (!%p2293_p10)  ;;  %3300 = vrcp.f32 (!%p2293_p10), %v1811_v33  ;;  %3005 = vmatpush3.bf16.msra.mxu0 (!%p2293_p10), %v3002_v13  ;;  %3049 = vmatpush3.bf16.msra.mxu1 (!%p2293_p10), %v3002_v13 }
 0x627   : > { %v1746_v58 = vadd.f32 %v1699_v43, %v1585_v18  ;;  %v1944_v18 = vld [vmem:[#allocation15 + $0x50] sm:$0xff] (!%p2293_p10)  ;;  %1850 = vperm.xlu0 (!%p2293_p10), %3276, %v3289_v51   ;;  %3007 = vmatprep.subr.bf16.mxu0 (!%p2293_p10), %v3006_v22  ;;  %3302 = vrcp.f32 (!%p2293_p10), %v1820_v23 }
 0x628   : > { %1763 = vst [vmem:[#allocation5 + $0x48] sm:$0xff] %v1747_v41  ;;  %v3291_v41 = vpop.eup (!%p2293_p10), %3290  ;;  %v1812_v43 = vld [vmem:[#allocation4 + $0x30] sm:$0xff] (!%p2293_p10)  ;;  %3042 = vmatprep.subr.bf16.mxu1 (!%p2293_p10), %v3006_v22 }
 0x629   : > { %1762 = vst [vmem:[#allocation5 + $0x40] sm:$0xff] %v1746_v58  ;;  %v2767_v31 = vpop.f32.mrb[26].mxu1  ;;  %v3293_v58 = vpop.eup (!%p2293_p10), %3292  ;;  %1895 = vperm.xlu1 (!%p2293_p10), %3277, %v3291_v41   ;;  %3304 = vrcp.f32 (!%p2293_p10), %v1812_v43 }
 0x62a   : > { %v1749_v11 = vadd.f32 %v2767_v31, %v1588_v15  ;;  %v1709_v20 = vpop.f32.mrb[27].mxu1  ;;  %v3010_v15 = vpack.c.bf16 (!%p2293_p10), %v1945_v12, %v1944_v18  ;;  %v1821_v31 = vld [vmem:[#allocation4 + $0x78] sm:$0xff] (!%p2293_p10)  ;;  %v3295_v53 = vpop.eup (!%p2293_p10), %3294  ;;  %3009 = vmatpush3.bf16.msra.mxu0 (!%p2293_p10), %v3006_v22  ;;  %3050 = vmatpush3.bf16.msra.mxu1 (!%p2293_p10), %v3006_v22 }
 0x62b   : > { %v1748_v54 = vadd.f32 %v1709_v20, %v1587_v30  ;;  %v1947_v30 = vld [vmem:[#allocation15 + $0x68] sm:$0xff] (!%p2293_p10)  ;;  %1855 = vperm.xlu0 (!%p2293_p10), %3276, %v3293_v58   ;;  %3306 = vrcp.f32 (!%p2293_p10), %v1821_v31  ;;  %v1797_v23 = vld [vmem:[#allocation5 + $0x38] sm:$0xff] (!%p2293_p10) }
 0x62c   : > { %1765 = vst [vmem:[#allocation5 + $0x58] sm:$0xff] %v1749_v11  ;;  %v1813_v11 = vld [vmem:[#allocation4 + $0x38] sm:$0xff] (!%p2293_p10)  ;;  %3011 = vmatprep.subr.bf16.mxu0 (!%p2293_p10), %v3010_v15  ;;  %3043 = vmatprep.subr.bf16.mxu1 (!%p2293_p10), %v3010_v15  ;;  %v1796_v6 = vld [vmem:[#allocation5 + $0x30] sm:$0xff] (!%p2293_p10) }
 0x62d   : > { %1764 = vst [vmem:[#allocation5 + $0x50] sm:$0xff] %v1748_v54  ;;  %v2770_v46 = vpop.f32.mrb[28].mxu1  ;;  %v3297_v20 = vpop.eup (!%p2293_p10), %3296  ;;  %v3014_v54 = vpack.c.bf16 (!%p2293_p10), %v1947_v30, %v1946_v57  ;;  %1900 = vperm.xlu1 (!%p2293_p10), %3277, %v3295_v53   ;;  %3308 = vrcp.f32 (!%p2293_p10), %v1813_v11 }
 0x62e   : > { %v1751_v56 = vadd.f32 %v2770_v46, %v1590_v39  ;;  %v1719_v14 = vpop.f32.mrb[29].mxu1  ;;  %v1948_v39 = vld [vmem:[#allocation15 + $0x70] sm:$0xff] (!%p2293_p10)  ;;  %3013 = vmatpush3.bf16.msra.mxu0 (!%p2293_p10), %v3010_v15  ;;  %3051 = vmatpush3.bf16.msra.mxu1 (!%p2293_p10), %v3010_v15 }
 0x62f   : > { %v1750_v52 = vadd.f32 %v1719_v14, %v1589_v50  ;;  %1789 = sbr.rel (%p2293_p10) target bundleno = 1939 (0x793), region = 76  ;;  %v1949_v50 = vld [vmem:[#allocation15 + $0x78] sm:$0xff] (!%p2293_p10)  ;;  %v3299_v42 = vpop.eup (!%p2293_p10), %3298  ;;  %1860 = vperm.xlu0 (!%p2293_p10), %3276, %v3297_v20   ;;  %3015 = vmatprep.subr.bf16.mxu0 (!%p2293_p10), %v3014_v54 }
 0x630   : > { %1767 = vst [vmem:[#allocation5 + $0x68] sm:$0xff] %v1751_v56  ;;  %v3301_v24 = vpop.eup (!%p2293_p10), %3300  ;;  %v3018_v46 = vpack.c.bf16 (!%p2293_p10), %v1949_v50, %v1948_v39  ;;  %3044 = vmatprep.subr.bf16.mxu1 (!%p2293_p10), %v3014_v54  ;;  %v1798_v61 = vld [vmem:[#allocation5 + $0x40] sm:$0xff] (!%p2293_p10) }
 0x631   : > { %1766 = vst [vmem:[#allocation5 + $0x60] sm:$0xff] %v1750_v52  ;;  %v2773_v29 = vpop.f32.mrb[30].mxu1  ;;  %1905 = vperm.xlu1 (!%p2293_p10), %3277, %v3299_v42   ;;  %v3303_v60 = vpop.eup (!%p2293_p10), %3302  ;;  %v1791_v52 = vld [vmem:[#allocation5 + $0x8] sm:$0xff] (!%p2293_p10) }
 0x632   : > { %v1753_v16 = vadd.f32 %v2773_v29, %v1592_v59  ;;  %v1729_v62 = vpop.f32.mrb[31].mxu1  ;;  %3017 = vmatpush3.bf16.msra.mxu0 (!%p2293_p10), %v3014_v54  ;;  %3052 = vmatpush3.bf16.msra.mxu1 (!%p2293_p10), %v3014_v54  ;;  %v1790_v59 = vld [vmem:[#allocation5] sm:$0xff] (!%p2293_p10) }
 0x633   : > { %v1752_v7 = vadd.f32 %v1729_v62, %v1591_v44  ;;  %1865 = vperm.xlu0 (!%p2293_p10), %3276, %v3301_v24   ;;  %v3305_v26 = vpop.eup (!%p2293_p10), %3304  ;;  %3019 = vmatprep.subr.bf16.mxu0 (!%p2293_p10), %v3018_v46  ;;  %v1801_v47 = vld [vmem:[#allocation5 + $0x58] sm:$0xff] (!%p2293_p10) }
 0x634   : > { %1769 = vst [vmem:[#allocation5 + $0x78] sm:$0xff] %v1753_v16  ;;  %3045 = vmatprep.subr.bf16.mxu1 (!%p2293_p10), %v3018_v46  ;;  %v1800_v19 = vld [vmem:[#allocation5 + $0x50] sm:$0xff] (!%p2293_p10) }
 0x635   : > { %1768 = vst [vmem:[#allocation5 + $0x70] sm:$0xff] %v1752_v7  ;;  %1910 = vperm.xlu1 (!%p2293_p10), %3277, %v3303_v60   ;;  %v3307_v56 = vpop.eup (!%p2293_p10), %3306  ;;  %v1799_v7 = vld [vmem:[#allocation5 + $0x48] sm:$0xff] (!%p2293_p10) }
 0x636   : > { %3021 = vmatpush3.bf16.msra.mxu0 %v3018_v46  ;;  %3053 = vmatpush3.bf16.msra.mxu1 %v3018_v46 }
 0x637   : > { %1870 = vperm.xlu0 %3276, %v3305_v26   ;;  %v3309_v14 = vpop.eup %3308  ;;  %v1803_v34 = vld [vmem:[#allocation5 + $0x68] sm:$0xff] }
 0x638   : > { %v1802_v35 = vld [vmem:[#allocation5 + $0x60] sm:$0xff] }
 0x639   : > { %1915 = vperm.xlu1 %3277, %v3307_v56  }
 0x63b   : > { %1875 = vperm.xlu0 %3276, %v3309_v14   ;;  %v1805_v12 = vld [vmem:[#allocation5 + $0x78] sm:$0xff] }
 0x63c   : > { %v1804_v40 = vld [vmem:[#allocation5 + $0x70] sm:$0xff] }
 0x69a   : > { %v1846_v44 = vpop.permute.xlu1 %1845 }
 0x69b   : > { %v1919_v29 = vmul.f32 %v1846_v44, %v1791_v52 }
 0x69d   : > { %v1841_v16 = vpop.permute.xlu0 %1840 }
 0x69e   : > { %v1918_v62 = vmul.f32 %v1841_v16, %v1790_v59  ;;  %v1886_v9 = vpop.permute.xlu1 %1885 }
 0x69f   : > { %v1927_v48 = vmul.f32 %v1886_v9, %v1799_v7 }
 0x6a0   : > { %2806 = vmatprep.mubr.f32.mxu0 %v1918_v62 }
 0x6a1   : > { %v1881_v63 = vpop.permute.xlu0 %1880  ;;  %2807 = vmatmul.mubr.f32.vlgmr.msra.gmra.mrb[0].mxu0 %v1919_v29 }
 0x6a2   : > { %v1926_v5 = vmul.f32 %v1881_v63, %v1798_v61 }
 0x6a3   : > { %v1891_v38 = vpop.permute.xlu1 %1890 }
 0x6a4   : > { %2818 = vmatprep.mubr.f32.mxu1 %v1926_v5  ;;  %v1928_v45 = vmul.f32 %v1891_v38, %v1800_v19 }
 0x6a5   : > { %2819 = vmatmul.mubr.f32.vlgmr.msra.gmra.mrb[0].mxu1 %v1927_v48 }
 0x6a6   : > { %v1851_v17 = vpop.permute.xlu0 %1850  ;;  %2821 = vmatprep.mubr.f32.mxu1 %v1928_v45 }
 0x6a7   : > { %v1920_v36 = vmul.f32 %v1851_v17, %v1792_v0 }
 0x6a8   : > { %v1896_v3 = vpop.permute.xlu1 %1895 }
 0x6a9   : > { %2809 = vmatprep.mubr.f32.mxu0 %v1920_v36  ;;  %v1929_v28 = vmul.f32 %v1896_v3, %v1801_v47 }
 0x6aa   : > { %v1856_v25 = vpop.permute.xlu0 %1855 }
 0x6ab   : > { %v1921_v10 = vmul.f32 %v1856_v25, %v1793_v1  ;;  %2822 = vmatmul.mubr.f32.gmra.mrb[2].mxu1 %v1929_v28 }
 0x6ac   : > { %v1901_v4 = vpop.permute.xlu1 %1900 }
 0x6ad   : > { %2810 = vmatmul.mubr.f32.gmra.mrb[2].mxu0 %v1921_v10  ;;  %v1930_v21 = vmul.f32 %v1901_v4, %v1802_v35 }
 0x6ae   : > { %v1861_v27 = vpop.permute.xlu0 %1860 }
 0x6af   : > { %v1922_v55 = vmul.f32 %v1861_v27, %v1794_v49  ;;  %2824 = vmatprep.mubr.f32.mxu1 %v1930_v21 }
 0x6b0   : > { %v1906_v2 = vpop.permute.xlu1 %1905 }
 0x6b1   : > { %2812 = vmatprep.mubr.f32.mxu0 %v1922_v55  ;;  %v1931_v13 = vmul.f32 %v1906_v2, %v1803_v34 }
 0x6b2   : > { %v1866_v32 = vpop.permute.xlu0 %1865 }
 0x6b3   : > { %v1923_v8 = vmul.f32 %v1866_v32, %v1795_v37  ;;  %2825 = vmatmul.mubr.f32.gmra.mrb[4].mxu1 %v1931_v13 }
 0x6b4   : > { %v1911_v33 = vpop.permute.xlu1 %1910 }
 0x6b5   : > { %2813 = vmatmul.mubr.f32.gmra.mrb[4].mxu0 %v1923_v8  ;;  %v1932_v51 = vmul.f32 %v1911_v33, %v1804_v40 }
 0x6b6   : > { %v1871_v22 = vpop.permute.xlu0 %1870 }
 0x6b7   : > { %v1924_v18 = vmul.f32 %v1871_v22, %v1796_v6  ;;  %2827 = vmatprep.mubr.f32.mxu1 %v1932_v51 }
 0x6b8   : > { %v1916_v41 = vpop.permute.xlu1 %1915 }
 0x6b9   : > { %2815 = vmatprep.mubr.f32.mxu0 %v1924_v18  ;;  %v1933_v43 = vmul.f32 %v1916_v41, %v1805_v12 }
 0x6ba   : > { %v1876_v58 = vpop.permute.xlu0 %1875 }
 0x6bb   : > { %v1925_v15 = vmul.f32 %v1876_v58, %v1797_v23  ;;  %2828 = vmatmul.mubr.f32.gmra.mrb[6].mxu1 %v1933_v43 }
 0x6bd   : > { %2816 = vmatmul.mubr.f32.gmra.mrb[6].mxu0 %v1925_v15 }
 0x774   : > { %v2808_v57 = vpop.f32.mrb[0].mxu0 }
 0x775   : > { %2096 = vst [vmem:[%s4030_s10 + $0x8] sm:$0xff] %v2808_v57  ;;  %v2016_v30 = vpop.f32.mrb[1].mxu0 }
 0x776   : > { %2095 = vst [vmem:[%s4030_s10] sm:$0xff] %v2016_v30 }
 0x778   : > { %v2820_v31 = vpop.f32.mrb[0].mxu1 }
 0x779   : > { %2104 = vst [vmem:[%s4030_s10 + $0x48] sm:$0xff] %v2820_v31  ;;  %v2056_v53 = vpop.f32.mrb[1].mxu1 }
 0x77a   : > { %2103 = vst [vmem:[%s4030_s10 + $0x40] sm:$0xff] %v2056_v53 }
 0x77e   : > { %v2823_v11 = vpop.f32.mrb[2].mxu1 }
 0x77f   : > { %2106 = vst [vmem:[%s4030_s10 + $0x58] sm:$0xff] %v2823_v11  ;;  %v2066_v54 = vpop.f32.mrb[3].mxu1 }
 0x780   : > { %v2811_v20 = vpop.f32.mrb[2].mxu0  ;;  %2105 = vst [vmem:[%s4030_s10 + $0x50] sm:$0xff] %v2066_v54 }
 0x781   : > { %2098 = vst [vmem:[%s4030_s10 + $0x18] sm:$0xff] %v2811_v20  ;;  %v2026_v39 = vpop.f32.mrb[3].mxu0 }
 0x782   : > { %2097 = vst [vmem:[%s4030_s10 + $0x10] sm:$0xff] %v2026_v39 }
 0x786   : > { %v2826_v50 = vpop.f32.mrb[4].mxu1 }
 0x787   : > { %2108 = vst [vmem:[%s4030_s10 + $0x68] sm:$0xff] %v2826_v50  ;;  %v2076_v24 = vpop.f32.mrb[5].mxu1 }
 0x788   : > { %v2814_v42 = vpop.f32.mrb[4].mxu0  ;;  %2107 = vst [vmem:[%s4030_s10 + $0x60] sm:$0xff] %v2076_v24 }
 0x789   : > { %2100 = vst [vmem:[%s4030_s10 + $0x28] sm:$0xff] %v2814_v42  ;;  %v2036_v46 = vpop.f32.mrb[5].mxu0 }
 0x78a   : > { %2099 = vst [vmem:[%s4030_s10 + $0x20] sm:$0xff] %v2036_v46 }
 0x78e   : > { %v2829_v60 = vpop.f32.mrb[6].mxu1 }
 0x78f   : > { %2110 = vst [vmem:[%s4030_s10 + $0x78] sm:$0xff] %v2829_v60  ;;  %v2086_v56 = vpop.f32.mrb[7].mxu1 }
 0x790   : > { %v2817_v26 = vpop.f32.mrb[6].mxu0  ;;  %2109 = vst [vmem:[%s4030_s10 + $0x70] sm:$0xff] %v2086_v56 }
 0x791   : > { %2102 = vst [vmem:[%s4030_s10 + $0x38] sm:$0xff] %v2817_v26  ;;  %v2046_v14 = vpop.f32.mrb[7].mxu0 }
 0x792   : > { %2101 = vst [vmem:[%s4030_s10 + $0x30] sm:$0xff] %v2046_v14 }
 0x793 PF: > { %s4619_s6 = sld [smem:[#allocation25_spill]]  ;;  %s4620_s14 = sld [smem:[#allocation32_spill]] }
 0x794   : > { %s2125_s19 = sshll.u32 %s4030_s10, 4  ;;  %s2112_s11 = scalar_lea.sflag [#allocation8], %s4000_s28  ;;  %s4496_s19 = int_to_ptr.vmem [resolvable:$true] %s2125_s19 }
 0x795   : > { %s3482_s17 = scalar_lea.vmem %s4496_s19, 2048  ;;  %p4621_p1 = scmp.ne.s32.totalorder %s4595_s2, 0 }
 0x796   : > { %p3483_p6 = scmp.ne.s32.totalorder %s4496_s19, %s3482_s17  ;;  %s3634_s12 = smov [#allocation17]  }
 0x797   : > { %s3486_s3 = sshll.u32 %s3634_s12, 4  ;;  %s3487_s3 = int_to_ptr.vmem [resolvable:$false] %s3486_s3 }
 0x798   : > { %p3484_p11 = pnand %p3483_p6, %p4621_p1  ;;  %s3488_s13 = scalar_lea.vmem %s3487_s3, 4096 }
 0x799   : > { %s2301_s16 = sshll.u32 %s4619_s6, 11  ;;  %p3489_p5 = scmp.lt.s32.totalorder %s4496_s19, %s3487_s3 }
 0x79a   : > { %s4493_s4 = scalar_lea.hbm %s4620_s14, %s2301_s16  ;;  %p3485_p8 = pneg %p3484_p11 }
 0x79b   : > { %p3490_p4 = scmp.lt.s32.totalorder %s3488_s13, %s3482_s17 }
 0x79d   : > { %p3491_p9 = por %p3490_p4, %p3489_p5 }
 0x79f   : > { %p3492_p0 = pnand %p3491_p9, %p3485_p8 }
 0x7a1   : > { %3495 = shalt.err (!%p3492_p0)
}
 0x7a2   : > { %s3496_s10 = scalar_lea.hbm %s4493_s4, 2048  ;;  %s3500_s16 = scalar_lea.hbm %s4620_s14, 4096 }
 0x7a3   : > { %p3497_p13 = scmp.ne.s32.totalorder %s4493_s4, %s3496_s10  ;;  %p3501_p2 = scmp.lt.u32.totalorder %s4493_s4, %s4620_s14 }
 0x7a4   : > { %p3502_p12 = scmp.lt.u32.totalorder %s3500_s16, %s3496_s10  ;;  %p3504_p6 = scmp.lt.u32.totalorder %s3496_s10, %s4493_s4 }
 0x7a5   : > { %p3498_p7 = pnand %p3497_p13, %p4621_p1 }
 0x7a6   : > { %p3503_p10 = por %p3502_p12, %p3501_p2 }
 0x7a7   : > { %p3499_p3 = pneg %p3498_p7 }
 0x7a8   : > { %p3505_p11 = por %p3504_p6, %p3503_p10 }
 0x7aa   : > { %p3506_p8 = pnand %p3505_p11, %p3499_p3 }
 0x7ac   : > { %3509 = shalt.err (!%p3506_p8)
}
 0x7ad   : > { %s3635_s17 = smov 128   ;;  %s3636_s12 = smov 8  }
 0x7ae   : > { %3074 = dma.vmem_to_hbm [thread:$0]  (%p4621_p1), %s4496_s19, 2048, %s4493_s4, %s2112_s11, %s3635_s17, %s3635_s17, %s3636_s12  }
 0x7af PF: > { %p3109_p5 = scmp.ge.s32.totalorder %s3620_s7, 2  ;;  %s2140_s3 = sand.u32 1, %s3592_s24  }
 0x7b0   : > { %p4622_p4 = scmp.ne.s32.totalorder %s4598_s20, 0  ;;  %s2141_s13 = scalar_lea.sflag [#allocation8], %s2140_s3 }
 0x7b2   : > { %p3097_p9 = pnand %p3109_p5, %p4622_p4 }
 0x7b4   : > { %3575 = dma.done.wait (!%p3097_p9), %s2141_s13, 2048  }
 0x7b5   : > { %3577 = vsyncadd (!%p3097_p9), %s2141_s13, 4294965248  ;;  %s27_s7 = sadd.s32 1, %s3620_s7   ;;  %s4623_s2 = smov %s4639_s21 }
 0x7b6   : > { %p24_p0 = scmp.ge.s32.totalorder %s27_s7, 6   ;;  %s4624_s21 = smov %s3584_s22 }
 0x7b7   : > { %s4625_s22 = smov %s3588_s23  ;;  %s4626_s23 = smov %s3943_s15 }
 0x7b8   : > { %s4627_s24 = smov %s3596_s25  ;;  %s4628_s25 = smov %s3600_s26 }
 0x7b9   : > { %s4629_s26 = smov %s3949_s0  ;;  %s4630_s27 = smov %s3612_s29 }
 0x7ba   : > { %s4631_s28 = smov %s3616_s30  ;;  %s4632_s29 = smov %s4635_s9 }
 0x7bb   : > { %s4633_s30 = smov %s4623_s2  ;;  %26 = sbr.rel (!%p24_p0) target bundleno = 19 (0x13), region = 126 }
 0x7c2   :  { %2146 = vsyncpa [#allocation7], 1 }
 0x7c3   :  { %2148 = vsyncpa [#allocation7 + $0x1], 1 }
 0x7c4   :  { %2149 = vsyncpa [#allocation10], 1 }
 0x7c5   :  { %2151 = vsyncpa [#allocation10 + $0x1], 1 }
 0x7c6   :  { %2152 = vsyncpa [#allocation13], 1 }
 0x7c7   :  { %2153 = vsyncpa [#allocation16], 1 }
 0x7c8   :  { %2154 = vsyncpa [#allocation8], 1 }
 0x7c9   :  { %2156 = vsyncpa [#allocation8 + $0x1], 1 }

</bundles_post_ra>
